<compile_context>
chip_gen: v7x
topology: tpu7x:2x2x1
jax: 0.10.0
libtpu: 0.0.40
codegen_flags: <defaults>
</compile_context>

<pallas_src>
import functools

import jax
import jax.numpy as jnp
from jax import lax
from jax.experimental import pallas as pl
from jax.experimental.pallas import tpu as pltpu


# 9 taps of a 3x3 conv, (kh, kw) row-major; dh = kh-1, dw = kw-1.
_TAPS = tuple((kh, kw) for kh in range(3) for kw in range(3))


@functools.lru_cache(maxsize=None)
def _roll_probe(dtype):
    """One tiny compile to pin down pltpu.roll: (available, matches jnp.roll sign).

    pltpu.roll keeps the +/-1 spatial taps on the XLU instead of lane-unaligned
    slice+concat relayouts; if it does not lower we fall back to jnp.roll.
    """
    try:
        def k(o_ref):
            v = lax.broadcasted_iota(jnp.float32, (8, 256), 1).astype(dtype)
            o_ref[...] = pltpu.roll(v, shift=1, axis=1)

        r = pl.pallas_call(k, out_shape=jax.ShapeDtypeStruct((8, 256), dtype))()
        jax.block_until_ready(r)
        return True, bool(float(r[0, 0]) == 255.0)   # jnp.roll(iota, 1)[0] == 255
    except Exception:                                 # conservative fallback
        return False, True


def _shift_lanes(v, delta, size, roll_cfg):
    """out[:, m] = v[:, (m + delta) % size] (wrap-around lanes are masked by the caller)."""
    if delta == 0:
        return v
    use_hw, jnp_sign = roll_cfg
    if use_hw:
        shift = (-delta) % size if jnp_sign else delta % size
        return pltpu.roll(v, shift=shift, axis=1)
    return jnp.roll(v, (-delta) % size, axis=1)


def _mish(v):
    # mish(x) = x * tanh(softplus(x)) = x * u(u+2) / (u(u+2)+2), u = e^x.
    # One exp + one approx reciprocal instead of exp + log1p + tanh (EUP has one VLIW slot).
    u = jnp.exp(jnp.minimum(v, 20.0))        # for x >= 20 the ratio rounds to exactly 1.0
    p = u * (u + 2.0)
    return v * p * pl.reciprocal(p + 2.0, approx=True)


# ----------------------------------------------------------------------------
# fused kernel
# ----------------------------------------------------------------------------
def _merge_layer_kernel(x_ref, y_ref, m_ref,
                        wmx_ref, wmy_ref, bm_ref,
                        s1_ref, t1_ref, w1_ref, b1_ref,
                        s2_ref, t2_ref, w2_ref, b2_ref,
                        wgt_ref, wgs_ref, bgt_ref, bgs_ref,
                        o_ref, res_ref, *, W, inv_rescale, roll_cfg, mxu_dtype):
    # Layout: activations are (C, M=H*W) -- channels on sublanes, spatial on lanes.
    # x_ref:(1,Cx,M) y_ref:(1,Cy,M) m_ref:(9,M) o_ref:(1,C,M)
    # wmx:(C,Cx) wmy:(C,Cy) w1/w2:(9,C,C) wgt/wgs:(C,C); biases / folded-BN scale+shift:(C,1).
    C = o_ref.shape[1]
    M = o_ref.shape[2]
    f32 = jnp.float32

    x2 = x_ref[0].astype(mxu_dtype)
    y2 = y_ref[0].astype(mxu_dtype)

    # --- merge 1x1 conv; interleave(x, y) is folded into the weight column split at init ---
    h = (jnp.dot(wmx_ref[...], x2, preferred_element_type=f32)
         + jnp.dot(wmy_ref[...], y2, preferred_element_type=f32)
         + bm_ref[...])
    res_ref[...] = h                          # residual branch stays in VMEM

    mb = m_ref[...]                           # (9, M) per-tap boundary masks (precomputed)

    def conv3x3(v, w_ref, b_ref):
        # 9 accumulated per-tap matmuls on lane-rolled views: no im2col buffer, no padded
        # scratch, no misaligned sublane slices; wrap-around lanes are masked out.
        vb = v.astype(mxu_dtype)
        acc = jnp.broadcast_to(b_ref[...], (C, M)).astype(f32)   # hoisted, once per conv
        for tap, (kh, kw) in enumerate(_TAPS):
            dh, dw = kh - 1, kw - 1
            shifted = _shift_lanes(vb, dh * W + dw, M, roll_cfg)
            contrib = jnp.dot(w_ref[tap], shifted, preferred_element_type=f32)
            if (dh, dw) != (0, 0):
                contrib = contrib * mb[tap:tap + 1, :]
            acc = acc + contrib
        return acc

    def bn_mish(v, s_ref, sh_ref):            # BN folded to per-channel scale/shift (f32)
        return _mish(v * s_ref[...] + sh_ref[...])

    t = conv3x3(bn_mish(h, s1_ref, t1_ref), w1_ref, b1_ref)
    t = conv3x3(bn_mish(t, s2_ref, t2_ref), w2_ref, b2_ref)

    # --- gate layer: the 0::2 / 1::2 output split becomes two lane-aligned (C,C) matmuls ---
    tb = t.astype(mxu_dtype)
    val = jnp.tanh(jnp.dot(wgt_ref[...], tb, preferred_element_type=f32) + bgt_ref[...])
    g = jnp.dot(wgs_ref[...], tb, preferred_element_type=f32) + bgs_ref[...]
    gate = 0.5 * (jnp.tanh(0.5 * g) + 1.0)    # sigmoid
    out = (val * gate + res_ref[...]) * inv_rescale
    o_ref[...] = out[None].astype(o_ref.dtype)


# ----------------------------------------------------------------------------
# module wrapper (parameters in canonical torch OIHW layout, kernel weights derived once)
# ----------------------------------------------------------------------------
def _init_conv(key, cin, cout, k):
    kw_, kb_ = jax.random.split(key)
    fan_in = cin * k * k
    bound = 1.0 / float(fan_in) ** 0.5
    w = jax.random.uniform(kw_, (cout, cin, k, k), jnp.float32, -bound, bound)  # OIHW
    b = jax.random.uniform(kb_, (cout,), jnp.float32, -bound, bound)
    return w, b


class MergeLayerPallas:
    """MergeLayer: interleave(x,y) -> Conv1x1 -> ResidualBlock(BN+Mish+Conv3x3 x2 + Gate) + skip."""

    def __init__(self, channels, scale_initialisation=False, *, key, mxu_dtype=jnp.bfloat16):
        try:
            iter(channels)
        except TypeError:
            channels = [channels] * 3
        else:
            channels = list(channels)
            if len(channels) == 1:
                channels = [channels[0]] * 3
        assert len(channels) == 3
        c0, c1, c2 = channels
        assert c0 == c1, "interleave requires equal channel counts"
        self.channels = (c0, c1, c2)
        self.rescale = float(c2) ** 0.5 if scale_initialisation else 1.0
        self.eps = 1e-5
        self.mxu_dtype = mxu_dtype

        k = jax.random.split(key, 4)
        self.w_merge, self.b_merge = _init_conv(k[0], c0 + c1, c2, 1)
        self.w_conv1, self.b_conv1 = _init_conv(k[1], c2, c2, 3)
        self.w_conv2, self.b_conv2 = _init_conv(k[2], c2, c2, 3)
        self.w_gate, self.b_gate = _init_conv(k[3], c2, 2 * c2, 1)
        z, o = jnp.zeros((c2,), jnp.float32), jnp.ones((c2,), jnp.float32)
        # TODO(synk): BatchNorm runs in inference mode (folded running stats); training-mode
        # batch statistics are not computed in-kernel.
        self.bn1 = dict(gamma=o, beta=z, mean=z, var=o)
        self.bn2 = dict(gamma=o, beta=z, mean=z, var=o)
        self._kparams = self._derive_kernel_params()

    def _derive_kernel_params(self):
        c0, c1, c2 = self.channels
        md = self.mxu_dtype
        # merge conv: fold channel interleave into the weight column split (x cols / y cols)
        wm2d = self.w_merge[:, :, 0, 0]                    # (c2, c0+c1)
        wmx = wm2d[:, 0::2].astype(md)                     # (c2, c0)
        wmy = wm2d[:, 1::2].astype(md)                     # (c2, c1)
        bm = self.b_merge.reshape(c2, 1)

        def fold_bn(bn):
            s = bn["gamma"] / jnp.sqrt(bn["var"] + self.eps)
            t = bn["beta"] - bn["mean"] * s
            return s.reshape(c2, 1), t.reshape(c2, 1)

        s1, t1 = fold_bn(self.bn1)
        s2, t2 = fold_bn(self.bn2)

        def conv_w_taps(w):   # OIHW -> (9, Cout, Cin), tap index = kh*3 + kw
            return jnp.transpose(w, (2, 3, 0, 1)).reshape(9, w.shape[0], w.shape[1]).astype(md)

        w1, b1 = conv_w_taps(self.w_conv1), self.b_conv1.reshape(c2, 1)
        w2, b2 = conv_w_taps(self.w_conv2), self.b_conv2.reshape(c2, 1)

        # gate conv: 0::2 (tanh) / 1::2 (sigmoid) output channels become two separate weights
        wg2d = self.w_gate[:, :, 0, 0]                     # (2*c2, c2)
        wgt = wg2d[0::2, :].astype(md)
        wgs = wg2d[1::2, :].astype(md)
        bgt = self.b_gate[0::2].reshape(c2, 1)
        bgs = self.b_gate[1::2].reshape(c2, 1)
        return (wmx, wmy, bm, s1, t1, w1, b1, s2, t2, w2, b2, wgt, wgs, bgt, bgs)

    def __call__(self, x_nchw, y_nchw):
        c0, c1, c2 = self.channels
        N, _, H, W = x_nchw.shape
        M = H * W
        x = x_nchw.reshape(N, c0, M)       # pure reshape: no transpose / HBM shuffle
        y = y_nchw.reshape(N, c1, M)

        # per-tap boundary masks (constant for a given H, W), computed once on the host
        row = jnp.repeat(jnp.arange(H), W)
        col = jnp.tile(jnp.arange(W), H)
        masks = jnp.stack([
            ((row + kh - 1 >= 0) & (row + kh - 1 <= H - 1) &
             (col + kw - 1 >= 0) & (col + kw - 1 <= W - 1))
            for kh, kw in _TAPS
        ]).astype(jnp.float32)             # (9, M)

        kern = functools.partial(
            _merge_layer_kernel, W=W, inv_rescale=1.0 / self.rescale,
            roll_cfg=_roll_probe(self.mxu_dtype), mxu_dtype=self.mxu_dtype)

        def rep(shape):                    # replicated (grid-invariant) parameter block
            # NOTE: left default double-buffered for compatibility; at large C consider
            # pipeline_mode=pl.Buffered(1) since the block index never changes.
            return pl.BlockSpec(shape, lambda n, _nd=len(shape): (0,) * _nd)

        # Explicit scoped-VMEM budget: double-buffered I/O blocks + parameters + generous
        # headroom for in-flight activations, clamped so it is safe on every generation
        # (including v7x's 64 MiB physical VMEM).
        bpe = 4
        act_bytes = c2 * M * bpe
        io_bytes = 2 * (c0 + c1 + c2 + 9) * M * bpe
        par_bytes = 2 * sum(int(p.size) * p.dtype.itemsize for p in self._kparams)
        vmem_limit = int(min(max(io_bytes + par_bytes + 8 * act_bytes, 32 << 20), 48 << 20))

        out = pl.pallas_call(
            kern,
            out_shape=jax.ShapeDtypeStruct((N, c2, M), jnp.float32),
            grid=(N,),
            in_specs=[
                pl.BlockSpec((1, c0, M), lambda n: (n, 0, 0)),
                pl.BlockSpec((1, c1, M), lambda n: (n, 0, 0)),
                rep((9, M)),
                rep((c2, c0)), rep((c2, c1)), rep((c2, 1)),
                rep((c2, 1)), rep((c2, 1)), rep((9, c2, c2)), rep((c2, 1)),
                rep((c2, 1)), rep((c2, 1)), rep((9, c2, c2)), rep((c2, 1)),
                rep((c2, c2)), rep((c2, c2)), rep((c2, 1)), rep((c2, 1)),
            ],
            out_specs=pl.BlockSpec((1, c2, M), lambda n: (n, 0, 0)),
            scratch_shapes=[pltpu.VMEM((c2, M), jnp.float32)],   # residual branch
            compiler_params=pltpu.CompilerParams(
                dimension_semantics=("parallel",),               # batch -> megacore
                vmem_limit_bytes=vmem_limit),
        )(x, y, masks, *self._kparams)
        # TODO(synk): for very large H*W*C add a halo'd spatial (row-block) grid axis so the
        # per-step working set stays under v7x's 64 MiB VMEM.
        return out.reshape(N, c2, H, W)    # pure reshape back to NCHW


# ----------------------------------------------------------------------------
# pure-JAX reference (mirrors the torch module, NCHW, f32)
# ----------------------------------------------------------------------------
def _reference(block, x, y):
    c0, c1, c2 = block.channels
    N = x.shape[0]
    ilv = jnp.stack((x, y), axis=2).reshape(N, c0 + c1, *x.shape[2:])   # channel interleave

    def conv(v, w, b, pad):
        o = lax.conv_general_dilated(v, w, (1, 1), [(pad, pad), (pad, pad)],
                                     dimension_numbers=("NCHW", "OIHW", "NCHW"))
        return o + b[None, :, None, None]

    def bn(v, p):
        s = p["gamma"] / jnp.sqrt(p["var"] + block.eps)
        t = p["beta"] - p["mean"] * s
        return v * s[None, :, None, None] + t[None, :, None, None]

    mish = lambda v: v * jnp.tanh(jax.nn.softplus(v))
    h = conv(ilv, block.w_merge, block.b_merge, 0)
    t = conv(mish(bn(h, block.bn1)), block.w_conv1, block.b_conv1, 1)
    t = conv(mish(bn(t, block.bn2)), block.w_conv2, block.b_conv2, 1)
    g = conv(t, block.w_gate, block.b_gate, 0)
    t = jnp.tanh(g[:, 0::2]) * jax.nn.sigmoid(g[:, 1::2])
    return (t + h) / block.rescale


# ----------------------------------------------------------------------------
if __name__ == "__main__":
    key = jax.random.PRNGKey(0)
    k_params, kx, ky = jax.random.split(key, 3)
    N, C, H, W = 2, 4, 16, 16

    layer = MergeLayerPallas(C, scale_initialisation=False, key=k_params)
    x = jax.random.normal(kx, (N, C, H, W), jnp.float32)
    y = jax.random.normal(ky, (N, C, H, W), jnp.float32)

    out = layer(x, y)
    jax.block_until_ready(out)

    ref = _reference(layer, x, y)
    assert out.shape == (N, C, H, W)
    err = float(jnp.max(jnp.abs(out - ref)))
    # Tolerance loosened from 1e-4: MXU operands are bf16 (f32 accumulation), reference is f32.
    assert jnp.allclose(out, ref, atol=5e-2, rtol=5e-2), f"max abs err {err}"
    print("KERNEL_OK")
</pallas_src>

<mosaic_0001>
module attributes {stable_mosaic.version = 11 : i64} {
  func.func @_merge_layer_kernel(%arg0: i32, %arg1: memref<1x4x256xf32, #tpu.memory_space<vmem>>, %arg2: memref<1x4x256xf32, #tpu.memory_space<vmem>>, %arg3: memref<9x256xf32, #tpu.memory_space<vmem>>, %arg4: memref<4x4xbf16, #tpu.memory_space<vmem>>, %arg5: memref<4x4xbf16, #tpu.memory_space<vmem>>, %arg6: memref<4x1xf32, #tpu.memory_space<vmem>>, %arg7: memref<4x1xf32, #tpu.memory_space<vmem>>, %arg8: memref<4x1xf32, #tpu.memory_space<vmem>>, %arg9: memref<9x4x4xbf16, #tpu.memory_space<vmem>>, %arg10: memref<4x1xf32, #tpu.memory_space<vmem>>, %arg11: memref<4x1xf32, #tpu.memory_space<vmem>>, %arg12: memref<4x1xf32, #tpu.memory_space<vmem>>, %arg13: memref<9x4x4xbf16, #tpu.memory_space<vmem>>, %arg14: memref<4x1xf32, #tpu.memory_space<vmem>>, %arg15: memref<4x4xbf16, #tpu.memory_space<vmem>>, %arg16: memref<4x4xbf16, #tpu.memory_space<vmem>>, %arg17: memref<4x1xf32, #tpu.memory_space<vmem>>, %arg18: memref<4x1xf32, #tpu.memory_space<vmem>>, %arg19: memref<1x4x256xf32, #tpu.memory_space<vmem>>, %arg20: memref<4x256xf32, #tpu.memory_space<vmem>>) attributes {dimension_semantics = [#tpu.dimension_semantics<parallel>], iteration_bounds = array<i64: 2>, scalar_prefetch = 0 : i64, scratch_operands = 1 : i64, tpu.core_type = #tpu.core_type<tc>, window_params = [{transform_indices = @transform_0, window_bounds = array<i64: 1, 4, 256>}, {transform_indices = @transform_1, window_bounds = array<i64: 1, 4, 256>}, {pipeline_mode = #tpu.pipeline_mode<synchronous>, transform_indices = @transform_2, window_bounds = array<i64: 9, 256>}, {pipeline_mode = #tpu.pipeline_mode<synchronous>, transform_indices = @transform_3, window_bounds = array<i64: 4, 4>}, {pipeline_mode = #tpu.pipeline_mode<synchronous>, transform_indices = @transform_4, window_bounds = array<i64: 4, 4>}, {pipeline_mode = #tpu.pipeline_mode<synchronous>, transform_indices = @transform_5, window_bounds = array<i64: 4, 1>}, {pipeline_mode = #tpu.pipeline_mode<synchronous>, transform_indices = @transform_6, window_bounds = array<i64: 4, 1>}, {pipeline_mode = #tpu.pipeline_mode<synchronous>, transform_indices = @transform_7, window_bounds = array<i64: 4, 1>}, {pipeline_mode = #tpu.pipeline_mode<synchronous>, transform_indices = @transform_8, window_bounds = array<i64: 9, 4, 4>}, {pipeline_mode = #tpu.pipeline_mode<synchronous>, transform_indices = @transform_9, window_bounds = array<i64: 4, 1>}, {pipeline_mode = #tpu.pipeline_mode<synchronous>, transform_indices = @transform_10, window_bounds = array<i64: 4, 1>}, {pipeline_mode = #tpu.pipeline_mode<synchronous>, transform_indices = @transform_11, window_bounds = array<i64: 4, 1>}, {pipeline_mode = #tpu.pipeline_mode<synchronous>, transform_indices = @transform_12, window_bounds = array<i64: 9, 4, 4>}, {pipeline_mode = #tpu.pipeline_mode<synchronous>, transform_indices = @transform_13, window_bounds = array<i64: 4, 1>}, {pipeline_mode = #tpu.pipeline_mode<synchronous>, transform_indices = @transform_14, window_bounds = array<i64: 4, 4>}, {pipeline_mode = #tpu.pipeline_mode<synchronous>, transform_indices = @transform_15, window_bounds = array<i64: 4, 4>}, {pipeline_mode = #tpu.pipeline_mode<synchronous>, transform_indices = @transform_16, window_bounds = array<i64: 4, 1>}, {pipeline_mode = #tpu.pipeline_mode<synchronous>, transform_indices = @transform_17, window_bounds = array<i64: 4, 1>}, {transform_indices = @transform_18, window_bounds = array<i64: 1, 4, 256>}]} {
    %c0 = arith.constant 0 : index
    %c0_0 = arith.constant 0 : index
    %c0_1 = arith.constant 0 : index
    %0 = vector.load %arg1[%c0, %c0_0, %c0_1] : memref<1x4x256xf32, #tpu.memory_space<vmem>>, vector<1x4x256xf32>
    %1 = vector.shape_cast %0 : vector<1x4x256xf32> to vector<4x256xf32>
    %2 = arith.truncf %1 : vector<4x256xf32> to vector<4x256xbf16>
    %c0_2 = arith.constant 0 : index
    %c0_3 = arith.constant 0 : index
    %c0_4 = arith.constant 0 : index
    %3 = vector.load %arg2[%c0_2, %c0_3, %c0_4] : memref<1x4x256xf32, #tpu.memory_space<vmem>>, vector<1x4x256xf32>
    %4 = vector.shape_cast %3 : vector<1x4x256xf32> to vector<4x256xf32>
    %5 = arith.truncf %4 : vector<4x256xf32> to vector<4x256xbf16>
    %c0_5 = arith.constant 0 : index
    %c0_6 = arith.constant 0 : index
    %6 = vector.load %arg4[%c0_5, %c0_6] : memref<4x4xbf16, #tpu.memory_space<vmem>>, vector<4x4xbf16>
    %cst = arith.constant dense<0.000000e+00> : vector<4x256xf32>
    %7 = tpu.matmul %6, %2, %cst {dimension_numbers = #tpu.dot_dimension_numbers<[1], [0], [0], [1], [0, 0, 1, 1], [], []>} : vector<4x4xbf16>, vector<4x256xbf16>, vector<4x256xf32> -> vector<4x256xf32>
    %c0_7 = arith.constant 0 : index
    %c0_8 = arith.constant 0 : index
    %8 = vector.load %arg5[%c0_7, %c0_8] : memref<4x4xbf16, #tpu.memory_space<vmem>>, vector<4x4xbf16>
    %cst_9 = arith.constant dense<0.000000e+00> : vector<4x256xf32>
    %9 = tpu.matmul %8, %5, %cst_9 {dimension_numbers = #tpu.dot_dimension_numbers<[1], [0], [0], [1], [0, 0, 1, 1], [], []>} : vector<4x4xbf16>, vector<4x256xbf16>, vector<4x256xf32> -> vector<4x256xf32>
    %10 = arith.addf %7, %9 : vector<4x256xf32>
    %c0_10 = arith.constant 0 : index
    %c0_11 = arith.constant 0 : index
    %11 = vector.load %arg6[%c0_10, %c0_11] : memref<4x1xf32, #tpu.memory_space<vmem>>, vector<4x1xf32>
    %12 = vector.broadcast %11 : vector<4x1xf32> to vector<4x256xf32>
    %13 = arith.addf %10, %12 : vector<4x256xf32>
    %c0_12 = arith.constant 0 : index
    %c0_13 = arith.constant 0 : index
    %14 = vector.load %arg20[%c0_12, %c0_13] : memref<4x256xf32, #tpu.memory_space<vmem>>, vector<4x256xf32>
    tpu.vector_store %arg20[%c0_12, %c0_13], %13 {strides = array<i32>} : memref<4x256xf32, #tpu.memory_space<vmem>>, vector<4x256xf32>,
    %c0_14 = arith.constant 0 : index
    %c0_15 = arith.constant 0 : index
    %15 = vector.load %arg3[%c0_14, %c0_15] : memref<9x256xf32, #tpu.memory_space<vmem>>, vector<9x256xf32>
    %c0_16 = arith.constant 0 : index
    %c0_17 = arith.constant 0 : index
    %16 = vector.load %arg7[%c0_16, %c0_17] : memref<4x1xf32, #tpu.memory_space<vmem>>, vector<4x1xf32>
    %17 = vector.broadcast %16 : vector<4x1xf32> to vector<4x256xf32>
    %18 = arith.mulf %13, %17 : vector<4x256xf32>
    %c0_18 = arith.constant 0 : index
    %c0_19 = arith.constant 0 : index
    %19 = vector.load %arg8[%c0_18, %c0_19] : memref<4x1xf32, #tpu.memory_space<vmem>>, vector<4x1xf32>
    %20 = vector.broadcast %19 : vector<4x1xf32> to vector<4x256xf32>
    %21 = arith.addf %18, %20 : vector<4x256xf32>
    %cst_20 = arith.constant 2.000000e+01 : f32
    %22 = vector.broadcast %cst_20 : f32 to vector<4x256xf32>
    %23 = arith.minimumf %21, %22 : vector<4x256xf32>
    %24 = math.exp %23 : vector<4x256xf32>
    %cst_21 = arith.constant 2.000000e+00 : f32
    %25 = vector.broadcast %cst_21 : f32 to vector<4x256xf32>
    %26 = arith.addf %24, %25 : vector<4x256xf32>
    %27 = arith.mulf %24, %26 : vector<4x256xf32>
    %28 = arith.mulf %21, %27 : vector<4x256xf32>
    %cst_22 = arith.constant 2.000000e+00 : f32
    %29 = vector.broadcast %cst_22 : f32 to vector<4x256xf32>
    %30 = arith.addf %27, %29 : vector<4x256xf32>
    %31 = tpu.reciprocal %30 {approx = true} : vector<4x256xf32> -> vector<4x256xf32>
    %32 = arith.mulf %28, %31 : vector<4x256xf32>
    %33 = arith.truncf %32 : vector<4x256xf32> to vector<4x256xbf16>
    %c0_23 = arith.constant 0 : index
    %c0_24 = arith.constant 0 : index
    %34 = vector.load %arg10[%c0_23, %c0_24] : memref<4x1xf32, #tpu.memory_space<vmem>>, vector<4x1xf32>
    %35 = vector.shape_cast %34 : vector<4x1xf32> to vector<4x1xf32>
    %36 = vector.broadcast %35 : vector<4x1xf32> to vector<4x256xf32>
    %37 = vector.extract_strided_slice %33 {offsets = [0, 239], sizes = [4, 17], strides = [1, 1]} : vector<4x256xbf16> to vector<4x17xbf16>
    %38 = vector.extract_strided_slice %33 {offsets = [0, 0], sizes = [4, 239], strides = [1, 1]} : vector<4x256xbf16> to vector<4x239xbf16>
    %39 = tpu.concatenate %37, %38 in 1 : vector<4x17xbf16>, vector<4x239xbf16> -> vector<4x256xbf16>
    %c0_25 = arith.constant 0 : index
    %c0_26 = arith.constant 0 : index
    %c0_27 = arith.constant 0 : index
    %40 = vector.load %arg9[%c0_25, %c0_26, %c0_27] : memref<9x4x4xbf16, #tpu.memory_space<vmem>>, vector<1x4x4xbf16>
    %41 = vector.shape_cast %40 : vector<1x4x4xbf16> to vector<4x4xbf16>
    %cst_28 = arith.constant dense<0.000000e+00> : vector<4x256xf32>
    %42 = tpu.matmul %41, %39, %cst_28 {dimension_numbers = #tpu.dot_dimension_numbers<[1], [0], [0], [1], [0, 0, 1, 1], [], []>} : vector<4x4xbf16>, vector<4x256xbf16>, vector<4x256xf32> -> vector<4x256xf32>
    %43 = vector.extract_strided_slice %15 {offsets = [0, 0], sizes = [1, 256], strides = [1, 1]} : vector<9x256xf32> to vector<1x256xf32>
    %44 = vector.broadcast %43 : vector<1x256xf32> to vector<4x256xf32>
    %45 = arith.mulf %42, %44 : vector<4x256xf32>
    %46 = arith.addf %36, %45 : vector<4x256xf32>
    %47 = vector.extract_strided_slice %33 {offsets = [0, 240], sizes = [4, 16], strides = [1, 1]} : vector<4x256xbf16> to vector<4x16xbf16>
    %48 = vector.extract_strided_slice %33 {offsets = [0, 0], sizes = [4, 240], strides = [1, 1]} : vector<4x256xbf16> to vector<4x240xbf16>
    %49 = tpu.concatenate %47, %48 in 1 : vector<4x16xbf16>, vector<4x240xbf16> -> vector<4x256xbf16>
    %c1 = arith.constant 1 : index
    %c0_29 = arith.constant 0 : index
    %c0_30 = arith.constant 0 : index
    %50 = vector.load %arg9[%c1, %c0_29, %c0_30] : memref<9x4x4xbf16, #tpu.memory_space<vmem>>, vector<1x4x4xbf16>
    %51 = vector.shape_cast %50 : vector<1x4x4xbf16> to vector<4x4xbf16>
    %cst_31 = arith.constant dense<0.000000e+00> : vector<4x256xf32>
    %52 = tpu.matmul %51, %49, %cst_31 {dimension_numbers = #tpu.dot_dimension_numbers<[1], [0], [0], [1], [0, 0, 1, 1], [], []>} : vector<4x4xbf16>, vector<4x256xbf16>, vector<4x256xf32> -> vector<4x256xf32>
    %53 = vector.extract_strided_slice %15 {offsets = [1, 0], sizes = [1, 256], strides = [1, 1]} : vector<9x256xf32> to vector<1x256xf32>
    %54 = vector.broadcast %53 : vector<1x256xf32> to vector<4x256xf32>
    %55 = arith.mulf %52, %54 : vector<4x256xf32>
    %56 = arith.addf %46, %55 : vector<4x256xf32>
    %57 = vector.extract_strided_slice %33 {offsets = [0, 241], sizes = [4, 15], strides = [1, 1]} : vector<4x256xbf16> to vector<4x15xbf16>
    %58 = vector.extract_strided_slice %33 {offsets = [0, 0], sizes = [4, 241], strides = [1, 1]} : vector<4x256xbf16> to vector<4x241xbf16>
    %59 = tpu.concatenate %57, %58 in 1 : vector<4x15xbf16>, vector<4x241xbf16> -> vector<4x256xbf16>
    %c2 = arith.constant 2 : index
    %c0_32 = arith.constant 0 : index
    %c0_33 = arith.constant 0 : index
    %60 = vector.load %arg9[%c2, %c0_32, %c0_33] : memref<9x4x4xbf16, #tpu.memory_space<vmem>>, vector<1x4x4xbf16>
    %61 = vector.shape_cast %60 : vector<1x4x4xbf16> to vector<4x4xbf16>
    %cst_34 = arith.constant dense<0.000000e+00> : vector<4x256xf32>
    %62 = tpu.matmul %61, %59, %cst_34 {dimension_numbers = #tpu.dot_dimension_numbers<[1], [0], [0], [1], [0, 0, 1, 1], [], []>} : vector<4x4xbf16>, vector<4x256xbf16>, vector<4x256xf32> -> vector<4x256xf32>
    %63 = vector.extract_strided_slice %15 {offsets = [2, 0], sizes = [1, 256], strides = [1, 1]} : vector<9x256xf32> to vector<1x256xf32>
    %64 = vector.broadcast %63 : vector<1x256xf32> to vector<4x256xf32>
    %65 = arith.mulf %62, %64 : vector<4x256xf32>
    %66 = arith.addf %56, %65 : vector<4x256xf32>
    %67 = vector.extract_strided_slice %33 {offsets = [0, 255], sizes = [4, 1], strides = [1, 1]} : vector<4x256xbf16> to vector<4x1xbf16>
    %68 = vector.extract_strided_slice %33 {offsets = [0, 0], sizes = [4, 255], strides = [1, 1]} : vector<4x256xbf16> to vector<4x255xbf16>
    %69 = tpu.concatenate %67, %68 in 1 : vector<4x1xbf16>, vector<4x255xbf16> -> vector<4x256xbf16>
    %c3 = arith.constant 3 : index
    %c0_35 = arith.constant 0 : index
    %c0_36 = arith.constant 0 : index
    %70 = vector.load %arg9[%c3, %c0_35, %c0_36] : memref<9x4x4xbf16, #tpu.memory_space<vmem>>, vector<1x4x4xbf16>
    %71 = vector.shape_cast %70 : vector<1x4x4xbf16> to vector<4x4xbf16>
    %cst_37 = arith.constant dense<0.000000e+00> : vector<4x256xf32>
    %72 = tpu.matmul %71, %69, %cst_37 {dimension_numbers = #tpu.dot_dimension_numbers<[1], [0], [0], [1], [0, 0, 1, 1], [], []>} : vector<4x4xbf16>, vector<4x256xbf16>, vector<4x256xf32> -> vector<4x256xf32>
    %73 = vector.extract_strided_slice %15 {offsets = [3, 0], sizes = [1, 256], strides = [1, 1]} : vector<9x256xf32> to vector<1x256xf32>
    %74 = vector.broadcast %73 : vector<1x256xf32> to vector<4x256xf32>
    %75 = arith.mulf %72, %74 : vector<4x256xf32>
    %76 = arith.addf %66, %75 : vector<4x256xf32>
    %c4 = arith.constant 4 : index
    %c0_38 = arith.constant 0 : index
    %c0_39 = arith.constant 0 : index
    %77 = vector.load %arg9[%c4, %c0_38, %c0_39] : memref<9x4x4xbf16, #tpu.memory_space<vmem>>, vector<1x4x4xbf16>
    %78 = vector.shape_cast %77 : vector<1x4x4xbf16> to vector<4x4xbf16>
    %cst_40 = arith.constant dense<0.000000e+00> : vector<4x256xf32>
    %79 = tpu.matmul %78, %33, %cst_40 {dimension_numbers = #tpu.dot_dimension_numbers<[1], [0], [0], [1], [0, 0, 1, 1], [], []>} : vector<4x4xbf16>, vector<4x256xbf16>, vector<4x256xf32> -> vector<4x256xf32>
    %80 = arith.addf %76, %79 : vector<4x256xf32>
    %81 = vector.extract_strided_slice %33 {offsets = [0, 1], sizes = [4, 255], strides = [1, 1]} : vector<4x256xbf16> to vector<4x255xbf16>
    %82 = vector.extract_strided_slice %33 {offsets = [0, 0], sizes = [4, 1], strides = [1, 1]} : vector<4x256xbf16> to vector<4x1xbf16>
    %83 = tpu.concatenate %81, %82 in 1 : vector<4x255xbf16>, vector<4x1xbf16> -> vector<4x256xbf16>
    %c5 = arith.constant 5 : index
    %c0_41 = arith.constant 0 : index
    %c0_42 = arith.constant 0 : index
    %84 = vector.load %arg9[%c5, %c0_41, %c0_42] : memref<9x4x4xbf16, #tpu.memory_space<vmem>>, vector<1x4x4xbf16>
    %85 = vector.shape_cast %84 : vector<1x4x4xbf16> to vector<4x4xbf16>
    %cst_43 = arith.constant dense<0.000000e+00> : vector<4x256xf32>
    %86 = tpu.matmul %85, %83, %cst_43 {dimension_numbers = #tpu.dot_dimension_numbers<[1], [0], [0], [1], [0, 0, 1, 1], [], []>} : vector<4x4xbf16>, vector<4x256xbf16>, vector<4x256xf32> -> vector<4x256xf32>
    %87 = vector.extract_strided_slice %15 {offsets = [5, 0], sizes = [1, 256], strides = [1, 1]} : vector<9x256xf32> to vector<1x256xf32>
    %88 = vector.broadcast %87 : vector<1x256xf32> to vector<4x256xf32>
    %89 = arith.mulf %86, %88 : vector<4x256xf32>
    %90 = arith.addf %80, %89 : vector<4x256xf32>
    %91 = vector.extract_strided_slice %33 {offsets = [0, 15], sizes = [4, 241], strides = [1, 1]} : vector<4x256xbf16> to vector<4x241xbf16>
    %92 = vector.extract_strided_slice %33 {offsets = [0, 0], sizes = [4, 15], strides = [1, 1]} : vector<4x256xbf16> to vector<4x15xbf16>
    %93 = tpu.concatenate %91, %92 in 1 : vector<4x241xbf16>, vector<4x15xbf16> -> vector<4x256xbf16>
    %c6 = arith.constant 6 : index
    %c0_44 = arith.constant 0 : index
    %c0_45 = arith.constant 0 : index
    %94 = vector.load %arg9[%c6, %c0_44, %c0_45] : memref<9x4x4xbf16, #tpu.memory_space<vmem>>, vector<1x4x4xbf16>
    %95 = vector.shape_cast %94 : vector<1x4x4xbf16> to vector<4x4xbf16>
    %cst_46 = arith.constant dense<0.000000e+00> : vector<4x256xf32>
    %96 = tpu.matmul %95, %93, %cst_46 {dimension_numbers = #tpu.dot_dimension_numbers<[1], [0], [0], [1], [0, 0, 1, 1], [], []>} : vector<4x4xbf16>, vector<4x256xbf16>, vector<4x256xf32> -> vector<4x256xf32>
    %97 = vector.extract_strided_slice %15 {offsets = [6, 0], sizes = [1, 256], strides = [1, 1]} : vector<9x256xf32> to vector<1x256xf32>
    %98 = vector.broadcast %97 : vector<1x256xf32> to vector<4x256xf32>
    %99 = arith.mulf %96, %98 : vector<4x256xf32>
    %100 = arith.addf %90, %99 : vector<4x256xf32>
    %101 = vector.extract_strided_slice %33 {offsets = [0, 16], sizes = [4, 240], strides = [1, 1]} : vector<4x256xbf16> to vector<4x240xbf16>
    %102 = vector.extract_strided_slice %33 {offsets = [0, 0], sizes = [4, 16], strides = [1, 1]} : vector<4x256xbf16> to vector<4x16xbf16>
    %103 = tpu.concatenate %101, %102 in 1 : vector<4x240xbf16>, vector<4x16xbf16> -> vector<4x256xbf16>
    %c7 = arith.constant 7 : index
    %c0_47 = arith.constant 0 : index
    %c0_48 = arith.constant 0 : index
    %104 = vector.load %arg9[%c7, %c0_47, %c0_48] : memref<9x4x4xbf16, #tpu.memory_space<vmem>>, vector<1x4x4xbf16>
    %105 = vector.shape_cast %104 : vector<1x4x4xbf16> to vector<4x4xbf16>
    %cst_49 = arith.constant dense<0.000000e+00> : vector<4x256xf32>
    %106 = tpu.matmul %105, %103, %cst_49 {dimension_numbers = #tpu.dot_dimension_numbers<[1], [0], [0], [1], [0, 0, 1, 1], [], []>} : vector<4x4xbf16>, vector<4x256xbf16>, vector<4x256xf32> -> vector<4x256xf32>
    %107 = vector.extract_strided_slice %15 {offsets = [7, 0], sizes = [1, 256], strides = [1, 1]} : vector<9x256xf32> to vector<1x256xf32>
    %108 = vector.broadcast %107 : vector<1x256xf32> to vector<4x256xf32>
    %109 = arith.mulf %106, %108 : vector<4x256xf32>
    %110 = arith.addf %100, %109 : vector<4x256xf32>
    %111 = vector.extract_strided_slice %33 {offsets = [0, 17], sizes = [4, 239], strides = [1, 1]} : vector<4x256xbf16> to vector<4x239xbf16>
    %112 = vector.extract_strided_slice %33 {offsets = [0, 0], sizes = [4, 17], strides = [1, 1]} : vector<4x256xbf16> to vector<4x17xbf16>
    %113 = tpu.concatenate %111, %112 in 1 : vector<4x239xbf16>, vector<4x17xbf16> -> vector<4x256xbf16>
    %c8 = arith.constant 8 : index
    %c0_50 = arith.constant 0 : index
    %c0_51 = arith.constant 0 : index
    %114 = vector.load %arg9[%c8, %c0_50, %c0_51] : memref<9x4x4xbf16, #tpu.memory_space<vmem>>, vector<1x4x4xbf16>
    %115 = vector.shape_cast %114 : vector<1x4x4xbf16> to vector<4x4xbf16>
    %cst_52 = arith.constant dense<0.000000e+00> : vector<4x256xf32>
    %116 = tpu.matmul %115, %113, %cst_52 {dimension_numbers = #tpu.dot_dimension_numbers<[1], [0], [0], [1], [0, 0, 1, 1], [], []>} : vector<4x4xbf16>, vector<4x256xbf16>, vector<4x256xf32> -> vector<4x256xf32>
    %117 = vector.extract_strided_slice %15 {offsets = [8, 0], sizes = [1, 256], strides = [1, 1]} : vector<9x256xf32> to vector<1x256xf32>
    %118 = vector.broadcast %117 : vector<1x256xf32> to vector<4x256xf32>
    %119 = arith.mulf %116, %118 : vector<4x256xf32>
    %120 = arith.addf %110, %119 : vector<4x256xf32>
    %c0_53 = arith.constant 0 : index
    %c0_54 = arith.constant 0 : index
    %121 = vector.load %arg11[%c0_53, %c0_54] : memref<4x1xf32, #tpu.memory_space<vmem>>, vector<4x1xf32>
    %122 = vector.broadcast %121 : vector<4x1xf32> to vector<4x256xf32>
    %123 = arith.mulf %120, %122 : vector<4x256xf32>
    %c0_55 = arith.constant 0 : index
    %c0_56 = arith.constant 0 : index
    %124 = vector.load %arg12[%c0_55, %c0_56] : memref<4x1xf32, #tpu.memory_space<vmem>>, vector<4x1xf32>
    %125 = vector.broadcast %124 : vector<4x1xf32> to vector<4x256xf32>
    %126 = arith.addf %123, %125 : vector<4x256xf32>
    %cst_57 = arith.constant 2.000000e+01 : f32
    %127 = vector.broadcast %cst_57 : f32 to vector<4x256xf32>
    %128 = arith.minimumf %126, %127 : vector<4x256xf32>
    %129 = math.exp %128 : vector<4x256xf32>
    %cst_58 = arith.constant 2.000000e+00 : f32
    %130 = vector.broadcast %cst_58 : f32 to vector<4x256xf32>
    %131 = arith.addf %129, %130 : vector<4x256xf32>
    %132 = arith.mulf %129, %131 : vector<4x256xf32>
    %133 = arith.mulf %126, %132 : vector<4x256xf32>
    %cst_59 = arith.constant 2.000000e+00 : f32
    %134 = vector.broadcast %cst_59 : f32 to vector<4x256xf32>
    %135 = arith.addf %132, %134 : vector<4x256xf32>
    %136 = tpu.reciprocal %135 {approx = true} : vector<4x256xf32> -> vector<4x256xf32>
    %137 = arith.mulf %133, %136 : vector<4x256xf32>
    %138 = arith.truncf %137 : vector<4x256xf32> to vector<4x256xbf16>
    %c0_60 = arith.constant 0 : index
    %c0_61 = arith.constant 0 : index
    %139 = vector.load %arg14[%c0_60, %c0_61] : memref<4x1xf32, #tpu.memory_space<vmem>>, vector<4x1xf32>
    %140 = vector.shape_cast %139 : vector<4x1xf32> to vector<4x1xf32>
    %141 = vector.broadcast %140 : vector<4x1xf32> to vector<4x256xf32>
    %142 = vector.extract_strided_slice %138 {offsets = [0, 239], sizes = [4, 17], strides = [1, 1]} : vector<4x256xbf16> to vector<4x17xbf16>
    %143 = vector.extract_strided_slice %138 {offsets = [0, 0], sizes = [4, 239], strides = [1, 1]} : vector<4x256xbf16> to vector<4x239xbf16>
    %144 = tpu.concatenate %142, %143 in 1 : vector<4x17xbf16>, vector<4x239xbf16> -> vector<4x256xbf16>
    %c0_62 = arith.constant 0 : index
    %c0_63 = arith.constant 0 : index
    %c0_64 = arith.constant 0 : index
    %145 = vector.load %arg13[%c0_62, %c0_63, %c0_64] : memref<9x4x4xbf16, #tpu.memory_space<vmem>>, vector<1x4x4xbf16>
    %146 = vector.shape_cast %145 : vector<1x4x4xbf16> to vector<4x4xbf16>
    %cst_65 = arith.constant dense<0.000000e+00> : vector<4x256xf32>
    %147 = tpu.matmul %146, %144, %cst_65 {dimension_numbers = #tpu.dot_dimension_numbers<[1], [0], [0], [1], [0, 0, 1, 1], [], []>} : vector<4x4xbf16>, vector<4x256xbf16>, vector<4x256xf32> -> vector<4x256xf32>
    %148 = vector.extract_strided_slice %15 {offsets = [0, 0], sizes = [1, 256], strides = [1, 1]} : vector<9x256xf32> to vector<1x256xf32>
    %149 = vector.broadcast %148 : vector<1x256xf32> to vector<4x256xf32>
    %150 = arith.mulf %147, %149 : vector<4x256xf32>
    %151 = arith.addf %141, %150 : vector<4x256xf32>
    %152 = vector.extract_strided_slice %138 {offsets = [0, 240], sizes = [4, 16], strides = [1, 1]} : vector<4x256xbf16> to vector<4x16xbf16>
    %153 = vector.extract_strided_slice %138 {offsets = [0, 0], sizes = [4, 240], strides = [1, 1]} : vector<4x256xbf16> to vector<4x240xbf16>
    %154 = tpu.concatenate %152, %153 in 1 : vector<4x16xbf16>, vector<4x240xbf16> -> vector<4x256xbf16>
    %c1_66 = arith.constant 1 : index
    %c0_67 = arith.constant 0 : index
    %c0_68 = arith.constant 0 : index
    %155 = vector.load %arg13[%c1_66, %c0_67, %c0_68] : memref<9x4x4xbf16, #tpu.memory_space<vmem>>, vector<1x4x4xbf16>
    %156 = vector.shape_cast %155 : vector<1x4x4xbf16> to vector<4x4xbf16>
    %cst_69 = arith.constant dense<0.000000e+00> : vector<4x256xf32>
    %157 = tpu.matmul %156, %154, %cst_69 {dimension_numbers = #tpu.dot_dimension_numbers<[1], [0], [0], [1], [0, 0, 1, 1], [], []>} : vector<4x4xbf16>, vector<4x256xbf16>, vector<4x256xf32> -> vector<4x256xf32>
    %158 = vector.extract_strided_slice %15 {offsets = [1, 0], sizes = [1, 256], strides = [1, 1]} : vector<9x256xf32> to vector<1x256xf32>
    %159 = vector.broadcast %158 : vector<1x256xf32> to vector<4x256xf32>
    %160 = arith.mulf %157, %159 : vector<4x256xf32>
    %161 = arith.addf %151, %160 : vector<4x256xf32>
    %162 = vector.extract_strided_slice %138 {offsets = [0, 241], sizes = [4, 15], strides = [1, 1]} : vector<4x256xbf16> to vector<4x15xbf16>
    %163 = vector.extract_strided_slice %138 {offsets = [0, 0], sizes = [4, 241], strides = [1, 1]} : vector<4x256xbf16> to vector<4x241xbf16>
    %164 = tpu.concatenate %162, %163 in 1 : vector<4x15xbf16>, vector<4x241xbf16> -> vector<4x256xbf16>
    %c2_70 = arith.constant 2 : index
    %c0_71 = arith.constant 0 : index
    %c0_72 = arith.constant 0 : index
    %165 = vector.load %arg13[%c2_70, %c0_71, %c0_72] : memref<9x4x4xbf16, #tpu.memory_space<vmem>>, vector<1x4x4xbf16>
    %166 = vector.shape_cast %165 : vector<1x4x4xbf16> to vector<4x4xbf16>
    %cst_73 = arith.constant dense<0.000000e+00> : vector<4x256xf32>
    %167 = tpu.matmul %166, %164, %cst_73 {dimension_numbers = #tpu.dot_dimension_numbers<[1], [0], [0], [1], [0, 0, 1, 1], [], []>} : vector<4x4xbf16>, vector<4x256xbf16>, vector<4x256xf32> -> vector<4x256xf32>
    %168 = vector.extract_strided_slice %15 {offsets = [2, 0], sizes = [1, 256], strides = [1, 1]} : vector<9x256xf32> to vector<1x256xf32>
    %169 = vector.broadcast %168 : vector<1x256xf32> to vector<4x256xf32>
    %170 = arith.mulf %167, %169 : vector<4x256xf32>
    %171 = arith.addf %161, %170 : vector<4x256xf32>
    %172 = vector.extract_strided_slice %138 {offsets = [0, 255], sizes = [4, 1], strides = [1, 1]} : vector<4x256xbf16> to vector<4x1xbf16>
    %173 = vector.extract_strided_slice %138 {offsets = [0, 0], sizes = [4, 255], strides = [1, 1]} : vector<4x256xbf16> to vector<4x255xbf16>
    %174 = tpu.concatenate %172, %173 in 1 : vector<4x1xbf16>, vector<4x255xbf16> -> vector<4x256xbf16>
    %c3_74 = arith.constant 3 : index
    %c0_75 = arith.constant 0 : index
    %c0_76 = arith.constant 0 : index
    %175 = vector.load %arg13[%c3_74, %c0_75, %c0_76] : memref<9x4x4xbf16, #tpu.memory_space<vmem>>, vector<1x4x4xbf16>
    %176 = vector.shape_cast %175 : vector<1x4x4xbf16> to vector<4x4xbf16>
    %cst_77 = arith.constant dense<0.000000e+00> : vector<4x256xf32>
    %177 = tpu.matmul %176, %174, %cst_77 {dimension_numbers = #tpu.dot_dimension_numbers<[1], [0], [0], [1], [0, 0, 1, 1], [], []>} : vector<4x4xbf16>, vector<4x256xbf16>, vector<4x256xf32> -> vector<4x256xf32>
    %178 = vector.extract_strided_slice %15 {offsets = [3, 0], sizes = [1, 256], strides = [1, 1]} : vector<9x256xf32> to vector<1x256xf32>
    %179 = vector.broadcast %178 : vector<1x256xf32> to vector<4x256xf32>
    %180 = arith.mulf %177, %179 : vector<4x256xf32>
    %181 = arith.addf %171, %180 : vector<4x256xf32>
    %c4_78 = arith.constant 4 : index
    %c0_79 = arith.constant 0 : index
    %c0_80 = arith.constant 0 : index
    %182 = vector.load %arg13[%c4_78, %c0_79, %c0_80] : memref<9x4x4xbf16, #tpu.memory_space<vmem>>, vector<1x4x4xbf16>
    %183 = vector.shape_cast %182 : vector<1x4x4xbf16> to vector<4x4xbf16>
    %cst_81 = arith.constant dense<0.000000e+00> : vector<4x256xf32>
    %184 = tpu.matmul %183, %138, %cst_81 {dimension_numbers = #tpu.dot_dimension_numbers<[1], [0], [0], [1], [0, 0, 1, 1], [], []>} : vector<4x4xbf16>, vector<4x256xbf16>, vector<4x256xf32> -> vector<4x256xf32>
    %185 = arith.addf %181, %184 : vector<4x256xf32>
    %186 = vector.extract_strided_slice %138 {offsets = [0, 1], sizes = [4, 255], strides = [1, 1]} : vector<4x256xbf16> to vector<4x255xbf16>
    %187 = vector.extract_strided_slice %138 {offsets = [0, 0], sizes = [4, 1], strides = [1, 1]} : vector<4x256xbf16> to vector<4x1xbf16>
    %188 = tpu.concatenate %186, %187 in 1 : vector<4x255xbf16>, vector<4x1xbf16> -> vector<4x256xbf16>
    %c5_82 = arith.constant 5 : index
    %c0_83 = arith.constant 0 : index
    %c0_84 = arith.constant 0 : index
    %189 = vector.load %arg13[%c5_82, %c0_83, %c0_84] : memref<9x4x4xbf16, #tpu.memory_space<vmem>>, vector<1x4x4xbf16>
    %190 = vector.shape_cast %189 : vector<1x4x4xbf16> to vector<4x4xbf16>
    %cst_85 = arith.constant dense<0.000000e+00> : vector<4x256xf32>
    %191 = tpu.matmul %190, %188, %cst_85 {dimension_numbers = #tpu.dot_dimension_numbers<[1], [0], [0], [1], [0, 0, 1, 1], [], []>} : vector<4x4xbf16>, vector<4x256xbf16>, vector<4x256xf32> -> vector<4x256xf32>
    %192 = vector.extract_strided_slice %15 {offsets = [5, 0], sizes = [1, 256], strides = [1, 1]} : vector<9x256xf32> to vector<1x256xf32>
    %193 = vector.broadcast %192 : vector<1x256xf32> to vector<4x256xf32>
    %194 = arith.mulf %191, %193 : vector<4x256xf32>
    %195 = arith.addf %185, %194 : vector<4x256xf32>
    %196 = vector.extract_strided_slice %138 {offsets = [0, 15], sizes = [4, 241], strides = [1, 1]} : vector<4x256xbf16> to vector<4x241xbf16>
    %197 = vector.extract_strided_slice %138 {offsets = [0, 0], sizes = [4, 15], strides = [1, 1]} : vector<4x256xbf16> to vector<4x15xbf16>
    %198 = tpu.concatenate %196, %197 in 1 : vector<4x241xbf16>, vector<4x15xbf16> -> vector<4x256xbf16>
    %c6_86 = arith.constant 6 : index
    %c0_87 = arith.constant 0 : index
    %c0_88 = arith.constant 0 : index
    %199 = vector.load %arg13[%c6_86, %c0_87, %c0_88] : memref<9x4x4xbf16, #tpu.memory_space<vmem>>, vector<1x4x4xbf16>
    %200 = vector.shape_cast %199 : vector<1x4x4xbf16> to vector<4x4xbf16>
    %cst_89 = arith.constant dense<0.000000e+00> : vector<4x256xf32>
    %201 = tpu.matmul %200, %198, %cst_89 {dimension_numbers = #tpu.dot_dimension_numbers<[1], [0], [0], [1], [0, 0, 1, 1], [], []>} : vector<4x4xbf16>, vector<4x256xbf16>, vector<4x256xf32> -> vector<4x256xf32>
    %202 = vector.extract_strided_slice %15 {offsets = [6, 0], sizes = [1, 256], strides = [1, 1]} : vector<9x256xf32> to vector<1x256xf32>
    %203 = vector.broadcast %202 : vector<1x256xf32> to vector<4x256xf32>
    %204 = arith.mulf %201, %203 : vector<4x256xf32>
    %205 = arith.addf %195, %204 : vector<4x256xf32>
    %206 = vector.extract_strided_slice %138 {offsets = [0, 16], sizes = [4, 240], strides = [1, 1]} : vector<4x256xbf16> to vector<4x240xbf16>
    %207 = vector.extract_strided_slice %138 {offsets = [0, 0], sizes = [4, 16], strides = [1, 1]} : vector<4x256xbf16> to vector<4x16xbf16>
    %208 = tpu.concatenate %206, %207 in 1 : vector<4x240xbf16>, vector<4x16xbf16> -> vector<4x256xbf16>
    %c7_90 = arith.constant 7 : index
    %c0_91 = arith.constant 0 : index
    %c0_92 = arith.constant 0 : index
    %209 = vector.load %arg13[%c7_90, %c0_91, %c0_92] : memref<9x4x4xbf16, #tpu.memory_space<vmem>>, vector<1x4x4xbf16>
    %210 = vector.shape_cast %209 : vector<1x4x4xbf16> to vector<4x4xbf16>
    %cst_93 = arith.constant dense<0.000000e+00> : vector<4x256xf32>
    %211 = tpu.matmul %210, %208, %cst_93 {dimension_numbers = #tpu.dot_dimension_numbers<[1], [0], [0], [1], [0, 0, 1, 1], [], []>} : vector<4x4xbf16>, vector<4x256xbf16>, vector<4x256xf32> -> vector<4x256xf32>
    %212 = vector.extract_strided_slice %15 {offsets = [7, 0], sizes = [1, 256], strides = [1, 1]} : vector<9x256xf32> to vector<1x256xf32>
    %213 = vector.broadcast %212 : vector<1x256xf32> to vector<4x256xf32>
    %214 = arith.mulf %211, %213 : vector<4x256xf32>
    %215 = arith.addf %205, %214 : vector<4x256xf32>
    %216 = vector.extract_strided_slice %138 {offsets = [0, 17], sizes = [4, 239], strides = [1, 1]} : vector<4x256xbf16> to vector<4x239xbf16>
    %217 = vector.extract_strided_slice %138 {offsets = [0, 0], sizes = [4, 17], strides = [1, 1]} : vector<4x256xbf16> to vector<4x17xbf16>
    %218 = tpu.concatenate %216, %217 in 1 : vector<4x239xbf16>, vector<4x17xbf16> -> vector<4x256xbf16>
    %c8_94 = arith.constant 8 : index
    %c0_95 = arith.constant 0 : index
    %c0_96 = arith.constant 0 : index
    %219 = vector.load %arg13[%c8_94, %c0_95, %c0_96] : memref<9x4x4xbf16, #tpu.memory_space<vmem>>, vector<1x4x4xbf16>
    %220 = vector.shape_cast %219 : vector<1x4x4xbf16> to vector<4x4xbf16>
    %cst_97 = arith.constant dense<0.000000e+00> : vector<4x256xf32>
    %221 = tpu.matmul %220, %218, %cst_97 {dimension_numbers = #tpu.dot_dimension_numbers<[1], [0], [0], [1], [0, 0, 1, 1], [], []>} : vector<4x4xbf16>, vector<4x256xbf16>, vector<4x256xf32> -> vector<4x256xf32>
    %222 = vector.extract_strided_slice %15 {offsets = [8, 0], sizes = [1, 256], strides = [1, 1]} : vector<9x256xf32> to vector<1x256xf32>
    %223 = vector.broadcast %222 : vector<1x256xf32> to vector<4x256xf32>
    %224 = arith.mulf %221, %223 : vector<4x256xf32>
    %225 = arith.addf %215, %224 : vector<4x256xf32>
    %226 = arith.truncf %225 : vector<4x256xf32> to vector<4x256xbf16>
    %c0_98 = arith.constant 0 : index
    %c0_99 = arith.constant 0 : index
    %227 = vector.load %arg15[%c0_98, %c0_99] : memref<4x4xbf16, #tpu.memory_space<vmem>>, vector<4x4xbf16>
    %cst_100 = arith.constant dense<0.000000e+00> : vector<4x256xf32>
    %228 = tpu.matmul %227, %226, %cst_100 {dimension_numbers = #tpu.dot_dimension_numbers<[1], [0], [0], [1], [0, 0, 1, 1], [], []>} : vector<4x4xbf16>, vector<4x256xbf16>, vector<4x256xf32> -> vector<4x256xf32>
    %c0_101 = arith.constant 0 : index
    %c0_102 = arith.constant 0 : index
    %229 = vector.load %arg17[%c0_101, %c0_102] : memref<4x1xf32, #tpu.memory_space<vmem>>, vector<4x1xf32>
    %230 = vector.broadcast %229 : vector<4x1xf32> to vector<4x256xf32>
    %231 = arith.addf %228, %230 : vector<4x256xf32>
    %232 = math.tanh %231 : vector<4x256xf32>
    %c0_103 = arith.constant 0 : index
    %c0_104 = arith.constant 0 : index
    %233 = vector.load %arg16[%c0_103, %c0_104] : memref<4x4xbf16, #tpu.memory_space<vmem>>, vector<4x4xbf16>
    %cst_105 = arith.constant dense<0.000000e+00> : vector<4x256xf32>
    %234 = tpu.matmul %233, %226, %cst_105 {dimension_numbers = #tpu.dot_dimension_numbers<[1], [0], [0], [1], [0, 0, 1, 1], [], []>} : vector<4x4xbf16>, vector<4x256xbf16>, vector<4x256xf32> -> vector<4x256xf32>
    %c0_106 = arith.constant 0 : index
    %c0_107 = arith.constant 0 : index
    %235 = vector.load %arg18[%c0_106, %c0_107] : memref<4x1xf32, #tpu.memory_space<vmem>>, vector<4x1xf32>
    %236 = vector.broadcast %235 : vector<4x1xf32> to vector<4x256xf32>
    %237 = arith.addf %234, %236 : vector<4x256xf32>
    %cst_108 = arith.constant 5.000000e-01 : f32
    %238 = vector.broadcast %cst_108 : f32 to vector<4x256xf32>
    %239 = arith.mulf %238, %237 : vector<4x256xf32>
    %240 = math.tanh %239 : vector<4x256xf32>
    %cst_109 = arith.constant 1.000000e+00 : f32
    %241 = vector.broadcast %cst_109 : f32 to vector<4x256xf32>
    %242 = arith.addf %240, %241 : vector<4x256xf32>
    %cst_110 = arith.constant 5.000000e-01 : f32
    %243 = vector.broadcast %cst_110 : f32 to vector<4x256xf32>
    %244 = arith.mulf %243, %242 : vector<4x256xf32>
    %245 = arith.mulf %232, %244 : vector<4x256xf32>
    %c0_111 = arith.constant 0 : index
    %c0_112 = arith.constant 0 : index
    %246 = vector.load %arg20[%c0_111, %c0_112] : memref<4x256xf32, #tpu.memory_space<vmem>>, vector<4x256xf32>
    %247 = arith.addf %245, %246 : vector<4x256xf32>
    %cst_113 = arith.constant 1.000000e+00 : f32
    %248 = vector.broadcast %cst_113 : f32 to vector<4x256xf32>
    %249 = arith.mulf %247, %248 : vector<4x256xf32>
    %250 = vector.shape_cast %249 : vector<4x256xf32> to vector<1x4x256xf32>
    %c0_114 = arith.constant 0 : index
    %c0_115 = arith.constant 0 : index
    %c0_116 = arith.constant 0 : index
    %251 = vector.load %arg19[%c0_114, %c0_115, %c0_116] : memref<1x4x256xf32, #tpu.memory_space<vmem>>, vector<1x4x256xf32>
    tpu.vector_store %arg19[%c0_114, %c0_115, %c0_116], %250 {strides = array<i32>} : memref<1x4x256xf32, #tpu.memory_space<vmem>>, vector<1x4x256xf32>,
    return
  }
  func.func @transform_0(%arg0: i32) -> (i32, i32, i32) {
    %c0_i32 = arith.constant 0 : i32
    %c0_i32_0 = arith.constant 0 : i32
    %c0_i32_1 = arith.constant 0 : i32
    return %arg0, %c0_i32, %c0_i32_0 : i32, i32, i32
  }
  func.func @transform_1(%arg0: i32) -> (i32, i32, i32) {
    %c0_i32 = arith.constant 0 : i32
    %c0_i32_0 = arith.constant 0 : i32
    %c0_i32_1 = arith.constant 0 : i32
    return %arg0, %c0_i32, %c0_i32_0 : i32, i32, i32
  }
  func.func @transform_2(%arg0: i32) -> (i32, i32) {
    %c0_i32 = arith.constant 0 : i32
    %c0_i32_0 = arith.constant 0 : i32
    %c0_i32_1 = arith.constant 0 : i32
    return %c0_i32, %c0_i32_0 : i32, i32
  }
  func.func @transform_3(%arg0: i32) -> (i32, i32) {
    %c0_i32 = arith.constant 0 : i32
    %c0_i32_0 = arith.constant 0 : i32
    %c0_i32_1 = arith.constant 0 : i32
    return %c0_i32, %c0_i32_0 : i32, i32
  }
  func.func @transform_4(%arg0: i32) -> (i32, i32) {
    %c0_i32 = arith.constant 0 : i32
    %c0_i32_0 = arith.constant 0 : i32
    %c0_i32_1 = arith.constant 0 : i32
    return %c0_i32, %c0_i32_0 : i32, i32
  }
  func.func @transform_5(%arg0: i32) -> (i32, i32) {
    %c0_i32 = arith.constant 0 : i32
    %c0_i32_0 = arith.constant 0 : i32
    %c0_i32_1 = arith.constant 0 : i32
    return %c0_i32, %c0_i32_0 : i32, i32
  }
  func.func @transform_6(%arg0: i32) -> (i32, i32) {
    %c0_i32 = arith.constant 0 : i32
    %c0_i32_0 = arith.constant 0 : i32
    %c0_i32_1 = arith.constant 0 : i32
    return %c0_i32, %c0_i32_0 : i32, i32
  }
  func.func @transform_7(%arg0: i32) -> (i32, i32) {
    %c0_i32 = arith.constant 0 : i32
    %c0_i32_0 = arith.constant 0 : i32
    %c0_i32_1 = arith.constant 0 : i32
    return %c0_i32, %c0_i32_0 : i32, i32
  }
  func.func @transform_8(%arg0: i32) -> (i32, i32, i32) {
    %c0_i32 = arith.constant 0 : i32
    %c0_i32_0 = arith.constant 0 : i32
    %c0_i32_1 = arith.constant 0 : i32
    %c0_i32_2 = arith.constant 0 : i32
    return %c0_i32, %c0_i32_0, %c0_i32_1 : i32, i32, i32
  }
  func.func @transform_9(%arg0: i32) -> (i32, i32) {
    %c0_i32 = arith.constant 0 : i32
    %c0_i32_0 = arith.constant 0 : i32
    %c0_i32_1 = arith.constant 0 : i32
    return %c0_i32, %c0_i32_0 : i32, i32
  }
  func.func @transform_10(%arg0: i32) -> (i32, i32) {
    %c0_i32 = arith.constant 0 : i32
    %c0_i32_0 = arith.constant 0 : i32
    %c0_i32_1 = arith.constant 0 : i32
    return %c0_i32, %c0_i32_0 : i32, i32
  }
  func.func @transform_11(%arg0: i32) -> (i32, i32) {
    %c0_i32 = arith.constant 0 : i32
    %c0_i32_0 = arith.constant 0 : i32
    %c0_i32_1 = arith.constant 0 : i32
    return %c0_i32, %c0_i32_0 : i32, i32
  }
  func.func @transform_12(%arg0: i32) -> (i32, i32, i32) {
    %c0_i32 = arith.constant 0 : i32
    %c0_i32_0 = arith.constant 0 : i32
    %c0_i32_1 = arith.constant 0 : i32
    %c0_i32_2 = arith.constant 0 : i32
    return %c0_i32, %c0_i32_0, %c0_i32_1 : i32, i32, i32
  }
  func.func @transform_13(%arg0: i32) -> (i32, i32) {
    %c0_i32 = arith.constant 0 : i32
    %c0_i32_0 = arith.constant 0 : i32
    %c0_i32_1 = arith.constant 0 : i32
    return %c0_i32, %c0_i32_0 : i32, i32
  }
  func.func @transform_14(%arg0: i32) -> (i32, i32) {
    %c0_i32 = arith.constant 0 : i32
    %c0_i32_0 = arith.constant 0 : i32
    %c0_i32_1 = arith.constant 0 : i32
    return %c0_i32, %c0_i32_0 : i32, i32
  }
  func.func @transform_15(%arg0: i32) -> (i32, i32) {
    %c0_i32 = arith.constant 0 : i32
    %c0_i32_0 = arith.constant 0 : i32
    %c0_i32_1 = arith.constant 0 : i32
    return %c0_i32, %c0_i32_0 : i32, i32
  }
  func.func @transform_16(%arg0: i32) -> (i32, i32) {
    %c0_i32 = arith.constant 0 : i32
    %c0_i32_0 = arith.constant 0 : i32
    %c0_i32_1 = arith.constant 0 : i32
    return %c0_i32, %c0_i32_0 : i32, i32
  }
  func.func @transform_17(%arg0: i32) -> (i32, i32) {
    %c0_i32 = arith.constant 0 : i32
    %c0_i32_0 = arith.constant 0 : i32
    %c0_i32_1 = arith.constant 0 : i32
    return %c0_i32, %c0_i32_0 : i32, i32
  }
  func.func @transform_18(%arg0: i32) -> (i32, i32, i32) {
    %c0_i32 = arith.constant 0 : i32
    %c0_i32_0 = arith.constant 0 : i32
    %c0_i32_1 = arith.constant 0 : i32
    return %arg0, %c0_i32, %c0_i32_0 : i32, i32, i32
  }
}

</mosaic_0001>

<bundles_post_ra>
// kernel: tpu_custom_call.1
= control target key start
LH: loop header
LB: loop body
LE: loop exit
PB: predicated region body
PF: predicated region fallthrough
CT: control target
= control target key end

     0   :  { %s3041_s0 = inlined_call_operand.vmem [shape: f32[2,4,256], index: 0, kind: input, shape index: {}]   ;;  %s3042_s1 = inlined_call_operand.vmem [shape: f32[2,4,256], index: 1, kind: input, shape index: {}]   ;;  %s3043_s2 = inlined_call_operand.vmem [shape: f32[9,256], index: 2, kind: input, shape index: {}]   ;;  %s3044_s3 = inlined_call_operand.vmem [shape: bf16[4,4], index: 3, kind: input, shape index: {}]   ;;  %s3045_s4 = inlined_call_operand.vmem [shape: bf16[4,4], index: 4, kind: input, shape index: {}]   ;;  %s3046_s5 = inlined_call_operand.vmem [shape: f32[4,1], index: 5, kind: input, shape index: {}]   ;;  %s3047_s6 = inlined_call_operand.vmem [shape: f32[4,1], index: 6, kind: input, shape index: {}]   ;;  %s3048_s7 = inlined_call_operand.vmem [shape: f32[4,1], index: 7, kind: input, shape index: {}]   ;;  %s3049_s8 = inlined_call_operand.vmem [shape: bf16[9,4,4], index: 8, kind: input, shape index: {}]   ;;  %s3050_s9 = inlined_call_operand.vmem [shape: f32[4,1], index: 9, kind: input, shape index: {}]   ;;  %s3051_s10 = inlined_call_operand.vmem [shape: f32[4,1], index: 10, kind: input, shape index: {}]   ;;  %s3052_s11 = inlined_call_operand.vmem [shape: f32[4,1], index: 11, kind: input, shape index: {}]   ;;  %s3053_s12 = inlined_call_operand.vmem [shape: bf16[9,4,4], index: 12, kind: input, shape index: {}]   ;;  %s3054_s13 = inlined_call_operand.vmem [shape: f32[4,1], index: 13, kind: input, shape index: {}]   ;;  %s3055_s14 = inlined_call_operand.vmem [shape: bf16[4,4], index: 14, kind: input, shape index: {}]   ;;  %s3056_s15 = inlined_call_operand.vmem [shape: bf16[4,4], index: 15, kind: input, shape index: {}]   ;;  %s3057_s16 = inlined_call_operand.vmem [shape: f32[4,1], index: 16, kind: input, shape index: {}]   ;;  %s3058_s17 = inlined_call_operand.vmem [shape: f32[4,1], index: 17, kind: input, shape index: {}]   ;;  %s3059_s18 = inlined_call_operand.hbm [shape: f32[2,4,256], index: 18, kind: output, shape index: {}]  }
   0x1   :  { %3070 = sst [smem:[#allocation12_spill]] %s3041_s0 }
   0x2   :  { %3071 = sst [smem:[#allocation13_spill]] %s3042_s1 }
   0x3   :  { %3072 = sst [smem:[#allocation14_spill]] %s3043_s2 }
   0x4   :  { %3073 = sst [smem:[#allocation15_spill]] %s3046_s5 }
   0x5   :  { %3074 = sst [smem:[#allocation16_spill]] %s3059_s18 }
   0x6   :  { %23 = vsyncpa [#allocation4], 0 }
   0x7   :  { %25 = vsyncpa [#allocation4 + $0x1], 0  ;;  %s2554_s27 = smov 0   ;;  %s2556_s28 = smov 0  }
   0x8   :  { %s2558_s29 = smov 0   ;;  %s2560_s30 = smov 0  }
   0x9 LB: > { %3075 = sst [smem:[#allocation6_spill]] %s2435_s27  ;;  %s2575_s0 = sadd.s32 4294967295, %s2447_s30   ;;  %s2447_s30 = sphi %s2560_s30, %s3092_s30   ;;  %s2443_s29 = sphi %s2558_s29, %s3094_s29   ;;  %s2439_s28 = sphi %s2556_s28, %s3096_s28   ;;  %s2435_s27 = sphi %s2554_s27, %s3095_s27  }
   0xa   : > { %3076 = sst [smem:[#allocation7_spill]] %s2443_s29  ;;  %s2229_s19 = sadd.s32 4294967294, %s2447_s30  }
   0xb   : > { %3077 = sst [smem:[#allocation8_spill]] %s2447_s30  ;;  %s2579_s1 = sadd.s32 1, %s2447_s30  }
   0xc   : > { %3078 = sst [smem:[#allocation9_spill]] %s2579_s1  ;;  %s426_s20 = sadd.s32 1, %s2443_s29 }
   0xd   : > { %s423_s21 = ssub.s32 %s2447_s30, %s2579_s1  ;;  %p436_p0 = scmp.ne.s32.totalorder %s2443_s29, %s2439_s28 }
   0xe   : > { %p424_p1 = scmp.eq.s32.totalorder %s423_s21, 0  ;;  %p437_p2 = scmp.eq.s32.totalorder %s2575_s0, 1 }
   0xf   : > { %p442_p3 = scmp.ne.s32.totalorder %s2439_s28, %s2435_s27  ;;  %p443_p4 = scmp.eq.s32.totalorder %s2229_s19, 1 }
  0x10   : > { %s2590_s22 = scalar_select %p424_p1, %s2443_s29, %s426_s20  }
  0x11   : > { %p2592_p5 = por %p437_p2, %p436_p0  ;;  %p2596_p6 = por %p443_p4, %p442_p3 }
  0x12   : > { %3079 = sst [smem:[#allocation10_spill]] %s2590_s22  ;;  %p2232_p7 = scmp.ge.s32.totalorder %s2447_s30, 1 }
  0x13   : > { %s3081_s23 = scalar_select %p2596_p6, 1, 0 }
  0x14   : > { %p525_p8 = scmp.lt.s32.totalorder %s2447_s30, 3 }
  0x15   : > { %3082 = sst [smem:[#allocation11_spill]] %s3081_s23 }
  0x16   : > { %p526_p9 = pnand %p2232_p7, %p525_p8 }
  0x17   : > { %p584_p10 = scmp.lt.s32.totalorder (!%p526_p9), %s2575_s0, 1  ;;  %v2449_v0 = vmov (!%p526_p9), 0   ;;  %s3083_s5 = sld [smem:[#allocation15_spill]] (!%p526_p9)  ;;  %v736_v2 = vld [vmem:[%s3048_s7] sm:$0xf] (!%p526_p9)  ;;  %vm613_vm0 = vcmask (!%p526_p9), 1041408  }
  0x18   : > { %529 = sbr.rel (%p526_p9) target bundleno = 1338 (0x53a), region = 92  ;;  %652 = vmatprep.mubr.bf16.mxu0 (!%p526_p9), %v2449_v0  ;;  %702 = vmatprep.mubr.bf16.mxu1 (!%p526_p9), %v2449_v0  ;;  %v728_v3 = vld [vmem:[%s3047_s6] sm:$0xf] (!%p526_p9)  ;;  %s3084_s24 = sld [smem:[#allocation13_spill]] (!%p526_p9)  ;;  %vm609_vm1 = vcmask (!%p526_p9), 31744   ;;  %vm776_vm2 = vcmask (!%p526_p9), 138240  }
  0x19   : > { %2357 = vset.pattern.permute.xlu0 (!%p526_p9), %v2449_v0  ;;  %2358 = vset.pattern.permute.xlu1 (!%p526_p9), %v2449_v0  ;;  %s3085_s30 = sld [smem:[#allocation12_spill]] (!%p526_p9)  ;;  %v608_v14 = vld [vmem:[%s3045_s4] sm:$0x3] (!%p526_p9)  ;;  %s2451_s1 = smov (!%p526_p9), 16   ;;  %vm848_vm3 = vcmask (!%p526_p9), 130048   ;;  %vm921_vm4 = vcmask (!%p526_p9), 121856  }
  0x1a   : > { %739 = vperm.xlu1 (!%p526_p9), %2358, %v736_v2   ;;  %v607_v15 = vld [vmem:[%s3044_s3] sm:$0x3] (!%p526_p9)  ;;  %s2452_s22 = smov (!%p526_p9), 15   ;;  %s2453_s23 = smov (!%p526_p9), 1   ;;  %vm994_vm5 = vcmask (!%p526_p9), 7168   ;;  %vm1121_vm6 = vcmask (!%p526_p9), 1039360  }
  0x1b   : > { %s2455_s19 = smov (!%p526_p9), 113   ;;  %s2456_s20 = smov (!%p526_p9), 112   ;;  %v1409_v56 = vld [vmem:[%s3051_s10] sm:$0xf] (!%p526_p9)  ;;  %vm1194_vm7 = vcmask (!%p526_p9), 924672   ;;  %vm1267_vm8 = vcmask (!%p526_p9), 916480  }
  0x1c   : > { %v764_v57 = vld [vmem:[%s3050_s9] sm:$0xf] (!%p526_p9)  ;;  %vm1340_vm9 = vcmask (!%p526_p9), 908288  }
  0x1d   : > { %v711_v1 = vld [vmem:[%s3083_s5] sm:$0xf] (!%p526_p9)  ;;  %s3086_s5 = sld [smem:[#allocation14_spill]] (!%p526_p9) }
  0x1e   : > { %714 = vperm.xlu0 (!%p526_p9), %2357, %v711_v1   ;;  %v1417_v58 = vld [vmem:[%s3052_s11] sm:$0xf] (!%p526_p9) }
  0x1f   : > { %s585_s26 = scalar_select %p584_p10, %s2575_s0, 1  ;;  %v782_v2 = vld [vmem:[%s3049_s8] sm:$0x3] }
  0x21   : > { %s2305_s21 = sshll.u32 %s585_s26, 3  ;;  %s2454_s26 = smov 127  }
  0x22   : > { %s593_s25 = scalar_lea.vmem %s3084_s24, %s2305_s21  ;;  %s588_s18 = scalar_lea.vmem %s3085_s30, %s2305_s21  ;;  %731 = vperm.xlu0 %2357, %v728_v3  }
  0x23   : > { %v601_v4 = vld [vmem:[%s593_s25] sm:$0xff]  ;;  %s2450_s30 = smov 17   ;;  %s3068_s21 = smov 111  }
  0x24   : > { %v595_v5 = vld [vmem:[%s588_s18] sm:$0xff]  ;;  %v603_v6 = vcombine.high %v601_v4, %v601_v4  ;;  %v605_v8 = vpack.c.bf16 %v601_v4, %v601_v4  ;;  %s3088_s18 = sld [smem:[#allocation16_spill]] }
  0x25   : > { %v597_v7 = vcombine.high %v595_v5, %v595_v5  ;;  %v599_v9 = vpack.c.bf16 %v595_v5, %v595_v5 }
  0x26   : > { %v606_v10 = vpack.c.bf16 %v603_v6, %v603_v6  ;;  %v615_v12 = vsel %vm613_vm0, %v605_v8, 0  ;;  %v2244_v8 = vld [vmem:[%s3049_s8 + $0x2] sm:$0x3] }
  0x27   : > { %v600_v11 = vpack.c.bf16 %v597_v7, %v597_v7  ;;  %v665_v13 = vsel %vm613_vm0, %v599_v9, 0 }
  0x28   : > { %2238 = vmatprep.subr.msk.bf16.mxu0 %vm613_vm0, %v606_v10 }
  0x29   : > { %2240 = vmatprep.subr.msk.bf16.mxu1 %vm613_vm0, %v600_v11  ;;  %621 = vmatpush1.bf16.msra.mxu0 %v615_v12 }
  0x2a   : > { %671 = vmatpush1.bf16.msra.mxu1 %v665_v13 }
  0x2c   : > { %2239 = vmatmul.mubr.msk.bf16.vlgmr.msra.gmra.mrb[0].mxu0 %vm609_vm1, %v608_v14  ;;  %v2247_v14 = vld [vmem:[%s3049_s8 + $0x4] sm:$0x3] }
  0x2d   : > { %2241 = vmatmul.mubr.msk.bf16.vlgmr.msra.gmra.mrb[0].mxu1 %vm609_vm1, %v607_v15  ;;  %823 = vmatprep.mubr.bf16.mxu0 %v2449_v0 }
  0x2e   : > { %896 = vmatprep.mubr.bf16.mxu1 %v2449_v0 }
  0x99   : > { %v740_v30 = vpop.permute.xlu1 %739 }
  0x9d   : > { %v715_v16 = vpop.permute.xlu0 %714 }
  0xa1   : > { %v732_v28 = vpop.permute.xlu0 %731 }
  0xff   : > { %v654_v17 = vpop.f32.mrb[0].mxu0 }
 0x100   : > { %v704_v18 = vpop.f32.mrb[0].mxu1  ;;  %v656_v20 = vpop.f32.mrb[1].mxu0 }
 0x101   : > { %v705_v19 = vadd.f32 %v704_v18, %v654_v17  ;;  %v706_v21 = vpop.f32.mrb[1].mxu1  ;;  %v658_v23 = vpop.f32.mrb[2].mxu0 }
 0x102   : > { %v707_v22 = vadd.f32 %v706_v21, %v656_v20  ;;  %v708_v24 = vpop.f32.mrb[2].mxu1  ;;  %v659_v26 = vpop.f32.mrb[3].mxu0  ;;  %v2250_v21 = vld [vmem:[%s3049_s8 + $0x6] sm:$0x3] }
 0x103   : > { %v2637_v25 = vadd.f32 %v715_v16, %v705_v19  ;;  %v709_v27 = vpop.f32.mrb[3].mxu1 }
 0x104   : > { %v2639_v29 = vadd.f32 %v715_v16, %v707_v22 }
 0x105   : > { %v734_v31 = vmul.f32 %v732_v28, %v2637_v25 }
 0x106   : > { %v721_v32 = vcombine.low %v2637_v25, %v2639_v29  ;;  %v735_v33 = vmul.f32 %v732_v28, %v2639_v29  ;;  %v2253_v28 = vld [vmem:[%s3049_s8 + $0x8] sm:$0x3] }
 0x107   : > { %v742_v34 = vadd.f32 %v740_v30, %v734_v31 }
 0x108   : > { %v743_v35 = vadd.f32 %v740_v30, %v735_v33 }
 0x109   : > { %v744_v36 = vmin.f32 %v742_v34, 20.0 }
 0x10a   : > { %v745_v37 = vmin.f32 %v743_v35, 20.0 }
 0x10b   : > { %v746_v38 = vmul.f32 1.442695, %v744_v36  ;;  %v2256_v36 = vld [vmem:[%s3049_s8 + $0xa] sm:$0x3] }
 0x10c   : > { %v748_v39 = vmul.f32 1.442695, %v745_v37 }
 0x10d   : > { %2361 = vpow2.f32 %v746_v38 }
 0x10e   : > { %2363 = vpow2.f32 %v748_v39 }
 0x117   : > { %v2362_v40 = vpop.eup %2361 }
 0x118   : > { %v2364_v41 = vpop.eup %2363  ;;  %v750_v42 = vadd.f32 2.0, %v2362_v40 }
 0x119   : > { %v751_v43 = vadd.f32 2.0, %v2364_v41 }
 0x11a   : > { %v752_v44 = vmul.f32 %v2362_v40, %v750_v42  ;;  %v2259_v42 = vld [vmem:[%s3049_s8 + $0xc] sm:$0x3] }
 0x11b   : > { %v753_v45 = vmul.f32 %v2364_v41, %v751_v43 }
 0x11c   : > { %v756_v46 = vadd.f32 2.0, %v752_v44  ;;  %v754_v48 = vmul.f32 %v752_v44, %v742_v34 }
 0x11d   : > { %v757_v47 = vadd.f32 2.0, %v753_v45  ;;  %v755_v50 = vmul.f32 %v753_v45, %v743_v35 }
 0x11e   : > { %2365 = vrcp.f32 %v756_v46 }
 0x11f   : > { %2367 = vrcp.f32 %v757_v47  ;;  %v2262_v47 = vld [vmem:[%s3049_s8 + $0xe] sm:$0x3] }
 0x128   : > { %v2366_v49 = vpop.eup %2365 }
 0x129   : > { %v2368_v51 = vpop.eup %2367  ;;  %v760_v52 = vmul.f32 %v2366_v49, %v754_v48  ;;  %v2265_v48 = vld [vmem:[%s3049_s8 + $0x10] sm:$0x3]  ;;  %v832_v49 = vlaneseq }
 0x12a   : > { %v761_v53 = vmul.f32 %v2368_v51, %v755_v50 }
 0x12b   : > { %v2645_v54 = vpack.c.bf16 %v760_v52, %v760_v52  ;;  %v2771_v50 = vshrl.u32 %v832_v49, 7  ;;  %v2777_v52 = vld [vmem:[%s3086_s5] sm:$0xff] }
 0x12c   : > { %v2647_v55 = vpack.c.bf16 %v761_v53, %v761_v53  ;;  %v2782_v53 = vld [vmem:[%s3086_s5 + $0x8] sm:$0xff] }
 0x12d   : > { %774 = vrot.lane.b32.xlu0 %v2645_v54, %s2450_s30  ;;  %v1069_v19 = vsel %vm613_vm0, %v2645_v54, 0  ;;  %v834_v51 = vsub.s32 0, %v2771_v50 }
 0x12e   : > { %771 = vrot.lane.b32.xlu1 %v2647_v55, %s2450_s30 }
 0x131   : > { %846 = vrot.lane.b32.xlu0 %v2645_v54, %s2451_s1 }
 0x132   : > { %844 = vrot.lane.b32.xlu1 %v2647_v55, %s2451_s1 }
 0x135   : > { %919 = vrot.lane.b32.xlu0 %v2645_v54, %s2452_s22 }
 0x136   : > { %917 = vrot.lane.b32.xlu1 %v2647_v55, %s2452_s22 }
 0x139   : > { %992 = vrot.lane.b32.xlu0 %v2645_v54, %s2453_s23 }
 0x13a   : > { %990 = vrot.lane.b32.xlu1 %v2647_v55, %s2453_s23 }
 0x13d   : > { %1119 = vrot.lane.b32.xlu0 %v2647_v55, %s2454_s26 }
 0x13e   : > { %1117 = vrot.lane.b32.xlu1 %v2645_v54, %s2454_s26 }
 0x141   : > { %1192 = vrot.lane.b32.xlu0 %v2647_v55, %s2455_s19 }
 0x142   : > { %1190 = vrot.lane.b32.xlu1 %v2645_v54, %s2455_s19 }
 0x145   : > { %1265 = vrot.lane.b32.xlu0 %v2647_v55, %s2456_s20 }
 0x146   : > { %1263 = vrot.lane.b32.xlu1 %v2645_v54, %s2456_s20 }
 0x149   : > { %1338 = vrot.lane.b32.xlu0 %v2647_v55, %s3068_s21 }
 0x14a   : > { %1336 = vrot.lane.b32.xlu1 %v2645_v54, %s3068_s21  ;;  %v2785_v54 = vrot.slane %v2777_v52, %v834_v51 }
 0x14d   : > { %1412 = vperm.xlu0 %2357, %v1409_v56   ;;  %v2789_v56 = vrot.slane %v2782_v53, %v834_v51 }
 0x14e   : > { %767 = vperm.xlu1 %2358, %v764_v57  }
 0x152   : > { %1420 = vperm.xlu1 %2358, %v1417_v58  }
 0x19f   : > { %v775_v59 = vpop.permute.xlu0 %774 }
 0x1a0   : > { %v772_v60 = vpop.permute.xlu1 %771 }
 0x1a1   : > { %v777_v61 = vsel %vm776_vm2, %v775_v59, %v772_v60  ;;  %v781_v62 = vsel %vm776_vm2, %v772_v60, %v775_v59 }
 0x1a2   : > { %v786_v63 = vsel %vm613_vm0, %v781_v62, 0  ;;  %2242 = vmatprep.subr.msk.bf16.mxu0 %vm613_vm0, %v777_v61  ;;  %v980_v61 = vsub.s32 2, %v2771_v50 }
 0x1a3   : > { %792 = vmatpush1.bf16.msra.mxu0 %v786_v63  ;;  %v847_v1 = vpop.permute.xlu0 %846 }
 0x1a4   : > { %v845_v3 = vpop.permute.xlu1 %844 }
 0x1a5   : > { %v849_v4 = vsel %vm848_vm3, %v847_v1, %v845_v3  ;;  %v853_v5 = vsel %vm848_vm3, %v845_v3, %v847_v1 }
 0x1a6   : > { %v859_v6 = vsel %vm613_vm0, %v853_v5, 0  ;;  %2243 = vmatmul.mubr.msk.bf16.vlgmr.msra.gmra.mrb[4].mxu0 %vm609_vm1, %v782_v2  ;;  %2245 = vmatprep.subr.msk.bf16.mxu1 %vm613_vm0, %v849_v4 }
 0x1a7   : > { %865 = vmatpush1.bf16.msra.mxu1 %v859_v6  ;;  %v920_v7 = vpop.permute.xlu0 %919  ;;  %969 = vmatprep.mubr.bf16.mxu0 %v2449_v0 }
 0x1a8   : > { %v918_v9 = vpop.permute.xlu1 %917 }
 0x1a9   : > { %v922_v10 = vsel %vm921_vm4, %v920_v7, %v918_v9  ;;  %v926_v11 = vsel %vm921_vm4, %v918_v9, %v920_v7  ;;  %v1053_v9 = vsub.s32 3, %v2771_v50 }
 0x1aa   : > { %v932_v12 = vsel %vm613_vm0, %v926_v11, 0  ;;  %2246 = vmatmul.mubr.msk.bf16.vlgmr.msra.gmra.mrb[4].mxu1 %vm609_vm1, %v2244_v8  ;;  %2248 = vmatprep.subr.msk.bf16.mxu0 %vm613_vm0, %v922_v10  ;;  %v2802_v8 = vrot.slane %v2777_v52, %v980_v61 }
 0x1ab   : > { %938 = vmatpush1.bf16.msra.mxu0 %v932_v12  ;;  %v993_v13 = vpop.permute.xlu0 %992  ;;  %1042 = vmatprep.mubr.bf16.mxu1 %v2449_v0 }
 0x1ac   : > { %v991_v15 = vpop.permute.xlu1 %990  ;;  %2254 = vmatprep.subr.msk.bf16.mxu0 %vm613_vm0, %v2647_v55  ;;  %v907_v55 = vsub.s32 1, %v2771_v50 }
 0x1ad   : > { %v995_v16 = vsel %vm994_vm5, %v993_v13, %v991_v15  ;;  %v999_v17 = vsel %vm994_vm5, %v991_v15, %v993_v13  ;;  %v2807_v13 = vrot.slane %v2782_v53, %v980_v61 }
 0x1ae   : > { %v1005_v18 = vsel %vm613_vm0, %v999_v17, 0  ;;  %2249 = vmatmul.mubr.msk.bf16.vlgmr.msra.gmra.mrb[8].mxu0 %vm609_vm1, %v2247_v14  ;;  %2251 = vmatprep.subr.msk.bf16.mxu1 %vm613_vm0, %v995_v16  ;;  %v2793_v60 = vrot.slane %v2777_v52, %v907_v55  ;;  %v2798_v1 = vrot.slane %v2782_v53, %v907_v55 }
 0x1af   : > { %1011 = vmatpush1.bf16.msra.mxu1 %v1005_v18  ;;  %v1120_v20 = vpop.permute.xlu0 %1119  ;;  %1075 = vmatpush1.bf16.msra.mxu0 %v1069_v19 }
 0x1b0   : > { %v1118_v22 = vpop.permute.xlu1 %1117  ;;  %1106 = vmatprep.mubr.bf16.mxu0 %v2449_v0 }
 0x1b1   : > { %v1122_v23 = vsel %vm1121_vm6, %v1118_v22, %v1120_v20  ;;  %v1126_v24 = vsel %vm1121_vm6, %v1120_v20, %v1118_v22  ;;  %v2811_v20 = vrot.slane %v2777_v52, %v1053_v9 }
 0x1b2   : > { %v1133_v26 = vsel %vm613_vm0, %v1122_v23, 0  ;;  %2252 = vmatmul.mubr.msk.bf16.vlgmr.msra.gmra.mrb[8].mxu1 %vm609_vm1, %v2250_v21  ;;  %2257 = vmatprep.subr.msk.bf16.mxu1 %vm613_vm0, %v1126_v24  ;;  %v2815_v23 = vrot.slane %v2782_v53, %v1053_v9 }
 0x1b3   : > { %1138 = vmatpush1.bf16.msra.mxu1 %v1133_v26  ;;  %v1193_v27 = vpop.permute.xlu0 %1192  ;;  %1169 = vmatprep.mubr.bf16.mxu1 %v2449_v0 }
 0x1b4   : > { %v1191_v30 = vpop.permute.xlu1 %1190 }
 0x1b5   : > { %v1195_v31 = vsel %vm1194_vm7, %v1191_v30, %v1193_v27  ;;  %v1199_v33 = vsel %vm1194_vm7, %v1193_v27, %v1191_v30 }
 0x1b6   : > { %v1206_v34 = vsel %vm613_vm0, %v1195_v31, 0  ;;  %2255 = vmatmul.mubr.msk.bf16.vlgmr.msra.gmra.mrb[12].mxu0 %vm609_vm1, %v2253_v28  ;;  %2260 = vmatprep.subr.msk.bf16.mxu0 %vm613_vm0, %v1199_v33  ;;  %v1180_v33 = vsub.s32 5, %v2771_v50 }
 0x1b7   : > { %v1266_v35 = vpop.permute.xlu0 %1265  ;;  %1211 = vmatpush1.bf16.msra.mxu0 %v1206_v34  ;;  %1242 = vmatprep.mubr.bf16.mxu0 %v2449_v0 }
 0x1b8   : > { %v1264_v37 = vpop.permute.xlu1 %1263 }
 0x1b9   : > { %v1268_v38 = vsel %vm1267_vm8, %v1264_v37, %v1266_v35  ;;  %v1272_v39 = vsel %vm1267_vm8, %v1266_v35, %v1264_v37 }
 0x1ba   : > { %v1279_v40 = vsel %vm613_vm0, %v1268_v38, 0  ;;  %2258 = vmatmul.mubr.msk.bf16.vlgmr.msra.gmra.mrb[12].mxu1 %vm609_vm1, %v2256_v36  ;;  %2263 = vmatprep.subr.msk.bf16.mxu1 %vm613_vm0, %v1272_v39 }
 0x1bb   : > { %1284 = vmatpush1.bf16.msra.mxu1 %v1279_v40  ;;  %v1339_v41 = vpop.permute.xlu0 %1338  ;;  %1315 = vmatprep.mubr.bf16.mxu1 %v2449_v0 }
 0x1bc   : > { %v1337_v43 = vpop.permute.xlu1 %1336 }
 0x1bd   : > { %v1341_v44 = vsel %vm1340_vm9, %v1337_v43, %v1339_v41  ;;  %v1345_v45 = vsel %vm1340_vm9, %v1339_v41, %v1337_v43  ;;  %v1253_v43 = vsub.s32 6, %v2771_v50 }
 0x1be   : > { %v1352_v46 = vsel %vm613_vm0, %v1341_v44, 0  ;;  %2261 = vmatmul.mubr.msk.bf16.vlgmr.msra.gmra.mrb[16].mxu0 %vm609_vm1, %v2259_v42  ;;  %2266 = vmatprep.subr.msk.bf16.mxu0 %vm613_vm0, %v1345_v45  ;;  %v2821_v42 = vrot.slane %v2777_v52, %v1180_v33 }
 0x1bf   : > { %1357 = vmatpush1.bf16.msra.mxu0 %v1352_v46  ;;  %1388 = vmatprep.mubr.bf16.mxu0 %v2449_v0  ;;  %v2825_v46 = vrot.slane %v2782_v53, %v1180_v33  ;;  %v2829_v55 = vrot.slane %v2777_v52, %v1253_v43  ;;  %v2834_v61 = vrot.slane %v2782_v53, %v1253_v43 }
 0x1c2   : > { %2264 = vmatmul.mubr.msk.bf16.vlgmr.msra.gmra.mrb[16].mxu1 %vm609_vm1, %v2262_v47 }
 0x1c3   : > { %1502 = vmatprep.mubr.bf16.mxu1 %v2449_v0 }
 0x1c6   : > { %2267 = vmatmul.mubr.msk.bf16.vlgmr.msra.gmra.mrb[20].mxu0 %vm609_vm1, %v2265_v48 }
 0x1c7   : > { %1565 = vmatprep.mubr.bf16.mxu0 %v2449_v0 }
 0x1cd   : > { %v768_v3 = vpop.permute.xlu1 %767 }
 0x279   : > { %v825_v57 = vpop.f32.mrb[4].mxu0 }
 0x27a   : > { %v840_v58 = vmul.f32 %v2785_v54, %v825_v57  ;;  %v827_v59 = vpop.f32.mrb[5].mxu0  ;;  %v1326_v57 = vsub.s32 7, %v2771_v50 }
 0x27b   : > { %v841_v62 = vmul.f32 %v2789_v56, %v827_v59  ;;  %v829_v63 = vpop.f32.mrb[6].mxu0 }
 0x27c   : > { %v830_v2 = vpop.f32.mrb[7].mxu0  ;;  %v842_v5 = vadd.f32 %v840_v58, %v768_v3  ;;  %v2842_v50 = vrot.slane %v2782_v53, %v1326_v57  ;;  %v2854_v53 = vld [vmem:[%s3086_s5 + $0x18] ss:$0 sm:$0xff] }
 0x27d   : > { %v898_v4 = vpop.f32.mrb[4].mxu1  ;;  %v843_v10 = vadd.f32 %v841_v62, %v768_v3 }
 0x27e   : > { %v913_v6 = vmul.f32 %v2793_v60, %v898_v4  ;;  %v900_v7 = vpop.f32.mrb[5].mxu1 }
 0x27f   : > { %v914_v11 = vmul.f32 %v2798_v1, %v900_v7  ;;  %v902_v12 = vpop.f32.mrb[6].mxu1 }
 0x280   : > { %v915_v14 = vadd.f32 %v913_v6, %v842_v5  ;;  %v903_v15 = vpop.f32.mrb[7].mxu1  ;;  %v2838_v6 = vrot.slane %v2777_v52, %v1326_v57  ;;  %v2849_v52 = vld [vmem:[%s3086_s5 + $0x10] ss:$0 sm:$0xff] }
 0x281   : > { %v916_v16 = vadd.f32 %v914_v11, %v843_v10  ;;  %v971_v17 = vpop.f32.mrb[8].mxu0 }
 0x282   : > { %v986_v18 = vmul.f32 %v2802_v8, %v971_v17  ;;  %v973_v19 = vpop.f32.mrb[9].mxu0 }
 0x283   : > { %v987_v21 = vmul.f32 %v2807_v13, %v973_v19  ;;  %v975_v22 = vpop.f32.mrb[10].mxu0 }
 0x284   : > { %v988_v24 = vadd.f32 %v986_v18, %v915_v14  ;;  %v976_v26 = vpop.f32.mrb[11].mxu0 }
 0x285   : > { %v989_v27 = vadd.f32 %v987_v21, %v916_v16  ;;  %v1044_v28 = vpop.f32.mrb[8].mxu1 }
 0x286   : > { %v1059_v30 = vmul.f32 %v2811_v20, %v1044_v28  ;;  %v1046_v31 = vpop.f32.mrb[9].mxu1 }
 0x287   : > { %v1060_v34 = vmul.f32 %v2815_v23, %v1046_v31  ;;  %v1048_v35 = vpop.f32.mrb[10].mxu1 }
 0x288   : > { %v1049_v36 = vpop.f32.mrb[11].mxu1  ;;  %v1061_v37 = vadd.f32 %v1059_v30, %v988_v24 }
 0x289   : > { %v1108_v38 = vpop.f32.mrb[12].mxu0  ;;  %v1062_v39 = vadd.f32 %v1060_v34, %v989_v27  ;;  %v1413_v34 = vpop.permute.xlu0 %1412 }
 0x28a   : > { %v1115_v40 = vadd.f32 %v1108_v38, %v1061_v37  ;;  %v1110_v41 = vpop.f32.mrb[13].mxu0  ;;  %v1421_v37 = vpop.permute.xlu1 %1420 }
 0x28b   : > { %v1116_v44 = vadd.f32 %v1110_v41, %v1062_v39  ;;  %v1112_v45 = vpop.f32.mrb[14].mxu0 }
 0x28c   : > { %v1113_v47 = vpop.f32.mrb[15].mxu0 }
 0x28d   : > { %v1171_v48 = vpop.f32.mrb[12].mxu1 }
 0x28e   : > { %v1186_v49 = vmul.f32 %v2821_v42, %v1171_v48  ;;  %v1173_v51 = vpop.f32.mrb[13].mxu1 }
 0x28f   : > { %v1187_v58 = vmul.f32 %v2825_v46, %v1173_v51  ;;  %v1175_v59 = vpop.f32.mrb[14].mxu1 }
 0x290   : > { %v1188_v62 = vadd.f32 %v1186_v49, %v1115_v40  ;;  %v1176_v63 = vpop.f32.mrb[15].mxu1 }
 0x291   : > { %v1189_v2 = vadd.f32 %v1187_v58, %v1116_v44  ;;  %v1244_v3 = vpop.f32.mrb[16].mxu0 }
 0x292   : > { %v1259_v4 = vmul.f32 %v2829_v55, %v1244_v3  ;;  %v1246_v5 = vpop.f32.mrb[17].mxu0 }
 0x293   : > { %v1260_v7 = vmul.f32 %v2834_v61, %v1246_v5  ;;  %v1248_v9 = vpop.f32.mrb[18].mxu0 }
 0x294   : > { %v1261_v10 = vadd.f32 %v1259_v4, %v1188_v62  ;;  %v1249_v11 = vpop.f32.mrb[19].mxu0 }
 0x295   : > { %v1262_v12 = vadd.f32 %v1260_v7, %v1189_v2  ;;  %v1317_v14 = vpop.f32.mrb[16].mxu1  ;;  %v2072_v11 = vld [vmem:[%s3058_s17] sm:$0xf] }
 0x296   : > { %v1332_v15 = vmul.f32 %v2838_v6, %v1317_v14  ;;  %v1319_v16 = vpop.f32.mrb[17].mxu1  ;;  %v2013_v14 = vld [vmem:[%s3057_s16] sm:$0xf] }
 0x297   : > { %v1333_v17 = vmul.f32 %v2842_v50, %v1319_v16  ;;  %v1321_v18 = vpop.f32.mrb[18].mxu1 }
 0x298   : > { %v1334_v19 = vadd.f32 %v1332_v15, %v1261_v10  ;;  %v1322_v21 = vpop.f32.mrb[19].mxu1 }
 0x299   : > { %v1335_v22 = vadd.f32 %v1333_v17, %v1262_v12  ;;  %v1390_v24 = vpop.f32.mrb[20].mxu0  ;;  %v1445_v12 = vld [vmem:[%s3054_s13] sm:$0xf] }
 0x29a   : > { %v1405_v26 = vmul.f32 %v2849_v52, %v1390_v24  ;;  %v1392_v27 = vpop.f32.mrb[21].mxu0 }
 0x29b   : > { %v1406_v28 = vmul.f32 %v2854_v53, %v1392_v27  ;;  %v1394_v30 = vpop.f32.mrb[22].mxu0 }
 0x29c   : > { %v1407_v31 = vadd.f32 %v1405_v26, %v1334_v19  ;;  %v1395_v33 = vpop.f32.mrb[23].mxu0 }
 0x29d   : > { %v1408_v35 = vadd.f32 %v1406_v28, %v1335_v22  ;;  %v1461_v22 = vld [vmem:[%s3053_s12] sm:$0x3] }
 0x29e   : > { %v1415_v36 = vmul.f32 %v1413_v34, %v1407_v31  ;;  %v2272_v31 = vld [vmem:[%s3053_s12 + $0x2] sm:$0x3] }
 0x29f   : > { %v1416_v38 = vmul.f32 %v1413_v34, %v1408_v35 }
 0x2a0   : > { %v1423_v39 = vadd.f32 %v1421_v37, %v1415_v36 }
 0x2a1   : > { %v1424_v40 = vadd.f32 %v1421_v37, %v1416_v38  ;;  %v2275_v38 = vld [vmem:[%s3053_s12 + $0x4] sm:$0x3] }
 0x2a2   : > { %v1425_v41 = vmin.f32 %v1423_v39, 20.0 }
 0x2a3   : > { %v1426_v43 = vmin.f32 %v1424_v40, 20.0 }
 0x2a4   : > { %v1427_v44 = vmul.f32 1.442695, %v1425_v41 }
 0x2a5   : > { %v1429_v45 = vmul.f32 1.442695, %v1426_v43 }
 0x2a6   : > { %2369 = vpow2.f32 %v1427_v44 }
 0x2a7   : > { %2371 = vpow2.f32 %v1429_v45 }
 0x2b0   : > { %v2370_v47 = vpop.eup %2369 }
 0x2b1   : > { %v2372_v48 = vpop.eup %2371  ;;  %v1431_v49 = vadd.f32 2.0, %v2370_v47 }
 0x2b2   : > { %v1432_v51 = vadd.f32 2.0, %v2372_v48 }
 0x2b3   : > { %v1433_v57 = vmul.f32 %v2370_v47, %v1431_v49  ;;  %v2278_v47 = vld [vmem:[%s3053_s12 + $0x6] sm:$0x3] }
 0x2b4   : > { %v1434_v58 = vmul.f32 %v2372_v48, %v1432_v51 }
 0x2b5   : > { %v1437_v59 = vadd.f32 2.0, %v1433_v57  ;;  %v1435_v63 = vmul.f32 %v1433_v57, %v1423_v39 }
 0x2b6   : > { %v1438_v62 = vadd.f32 2.0, %v1434_v58  ;;  %v1436_v3 = vmul.f32 %v1434_v58, %v1424_v40 }
 0x2b7   : > { %2373 = vrcp.f32 %v1437_v59  ;;  %v2281_v59 = vld [vmem:[%s3053_s12 + $0x8] sm:$0x3] }
 0x2b8   : > { %2375 = vrcp.f32 %v1438_v62 }
 0x2c1   : > { %v2374_v2 = vpop.eup %2373 }
 0x2c2   : > { %v2376_v4 = vpop.eup %2375  ;;  %v1441_v5 = vmul.f32 %v2374_v2, %v1435_v63 }
 0x2c3   : > { %v1442_v7 = vmul.f32 %v2376_v4, %v1436_v3 }
 0x2c4   : > { %v1443_v9 = vpack.c.bf16 %v1441_v5, %v1441_v5  ;;  %v2284_v5 = vld [vmem:[%s3053_s12 + $0xa] sm:$0x3] }
 0x2c5   : > { %v1444_v10 = vpack.c.bf16 %v1442_v7, %v1442_v7 }
 0x2c6   : > { %1455 = vrot.lane.b32.xlu1 %v1443_v9, %s2450_s30  ;;  %v1710_v44 = vsel %vm613_vm0, %v1443_v9, 0 }
 0x2c7   : > { %1452 = vrot.lane.b32.xlu0 %v1444_v10, %s2450_s30  ;;  %s3087_s30 = smov 111  }
 0x2ca   : > { %1517 = vrot.lane.b32.xlu1 %v1443_v9, %s2451_s1 }
 0x2cb   : > { %1515 = vrot.lane.b32.xlu0 %v1444_v10, %s2451_s1 }
 0x2ce   : > { %1580 = vrot.lane.b32.xlu1 %v1443_v9, %s2452_s22 }
 0x2cf   : > { %1578 = vrot.lane.b32.xlu0 %v1444_v10, %s2452_s22 }
 0x2d2   : > { %1643 = vrot.lane.b32.xlu1 %v1443_v9, %s2453_s23 }
 0x2d3   : > { %1641 = vrot.lane.b32.xlu0 %v1444_v10, %s2453_s23  ;;  %s581_s23 = sand.u32 1, %s2439_s28  }
 0x2d4   : > { %s2233_s25 = sshll.u32 %s581_s23, 3  ;;  %s2144_s24 = scalar_lea.sflag [#allocation4], %s581_s23 }
 0x2d6   : > { %1760 = vrot.lane.b32.xlu1 %v1444_v10, %s2454_s26 }
 0x2d7   : > { %1758 = vrot.lane.b32.xlu0 %v1443_v9, %s2454_s26  ;;  %s2307_s26 = sshll.u32 %s2575_s0, 7  ;;  %s2458_s0 = smov [#allocation3]  }
 0x2d8   : > { %s2999_s29 = scalar_lea.hbm %s3088_s18, %s2307_s26  ;;  %s2389_s1 = sshll.u32 %s2458_s0, 4  ;;  %s2390_s1 = int_to_ptr.vmem [resolvable:$false] %s2389_s1 }
 0x2d9   : > { %s2391_s22 = scalar_lea.vmem %s2390_s1, 256 }
 0x2da   : > { %1823 = vrot.lane.b32.xlu1 %v1444_v10, %s2455_s19 }
 0x2db   : > { %1821 = vrot.lane.b32.xlu0 %v1443_v9, %s2455_s19  ;;  %s583_s19 = scalar_lea.vmem [#allocation3], %s2233_s25 }
 0x2de   : > { %1886 = vrot.lane.b32.xlu1 %v1444_v10, %s2456_s20 }
 0x2df   : > { %1884 = vrot.lane.b32.xlu0 %v1443_v9, %s2456_s20  ;;  %s2158_s20 = sshll.u32 %s583_s19, 4  ;;  %s3001_s20 = int_to_ptr.vmem [resolvable:$true] %s2158_s20 }
 0x2e0   : > { %p2392_p0 = scmp.lt.s32.totalorder %s3001_s20, %s2390_s1 }
 0x2e2   : > { %1949 = vrot.lane.b32.xlu1 %v1444_v10, %s3087_s30 }
 0x2e3   : > { %1947 = vrot.lane.b32.xlu0 %v1443_v9, %s3087_s30  ;;  %s2385_s30 = scalar_lea.vmem %s3001_s20, 128 }
 0x2e4   : > { %p2386_p11 = scmp.ne.s32.totalorder %s3001_s20, %s2385_s30  ;;  %p2393_p1 = scmp.lt.s32.totalorder %s2391_s22, %s2385_s30 }
 0x2e6   : > { %2075 = vperm.xlu1 %2358, %v2072_v11   ;;  %p2387_p12 = pnand %p2386_p11, %p2592_p5  ;;  %p2394_p2 = por %p2393_p1, %p2392_p0 }
 0x2e7   : > { %1448 = vperm.xlu0 %2357, %v1445_v12  }
 0x2e8   : > { %p2388_p13 = pneg %p2387_p12 }
 0x2ea   : > { %p2395_p3 = pnand %p2394_p2, %p2388_p13 }
 0x2eb   : > { %2016 = vperm.xlu0 %2357, %v2013_v14   ;;  %v2287_v14 = vld [vmem:[%s3053_s12 + $0xc] sm:$0x3] }
 0x338   : > { %v1456_v15 = vpop.permute.xlu1 %1455 }
 0x339   : > { %v1453_v16 = vpop.permute.xlu0 %1452 }
 0x33a   : > { %v1457_v17 = vsel %vm776_vm2, %v1456_v15, %v1453_v16  ;;  %v1460_v18 = vsel %vm776_vm2, %v1453_v16, %v1456_v15 }
 0x33b   : > { %v1465_v19 = vsel %vm613_vm0, %v1460_v18, 0  ;;  %2270 = vmatprep.subr.msk.bf16.mxu1 %vm613_vm0, %v1457_v17 }
 0x33c   : > { %v1518_v21 = vpop.permute.xlu1 %1517  ;;  %1471 = vmatpush1.bf16.msra.mxu1 %v1465_v19  ;;  %v2290_v19 = vld [vmem:[%s3053_s12 + $0xe] sm:$0x3] }
 0x33d   : > { %v1516_v24 = vpop.permute.xlu0 %1515 }
 0x33e   : > { %v1519_v26 = vsel %vm848_vm3, %v1518_v21, %v1516_v24  ;;  %v1522_v27 = vsel %vm848_vm3, %v1516_v24, %v1518_v21  ;;  %v2293_v21 = vld [vmem:[%s3053_s12 + $0x10] sm:$0x3] }
 0x33f   : > { %v1528_v28 = vsel %vm613_vm0, %v1522_v27, 0  ;;  %2271 = vmatmul.mubr.msk.bf16.vlgmr.msra.gmra.mrb[20].mxu1 %vm609_vm1, %v1461_v22  ;;  %2273 = vmatprep.subr.msk.bf16.mxu0 %vm613_vm0, %v1519_v26 }
 0x340   : > { %v1581_v30 = vpop.permute.xlu1 %1580  ;;  %1534 = vmatpush1.bf16.msra.mxu0 %v1528_v28  ;;  %1628 = vmatprep.mubr.bf16.mxu1 %v2449_v0 }
 0x341   : > { %v1579_v33 = vpop.permute.xlu0 %1578 }
 0x342   : > { %v1582_v34 = vsel %vm921_vm4, %v1581_v30, %v1579_v33  ;;  %v1585_v35 = vsel %vm921_vm4, %v1579_v33, %v1581_v30 }
 0x343   : > { %v1591_v36 = vsel %vm613_vm0, %v1585_v35, 0  ;;  %2274 = vmatmul.mubr.msk.bf16.vlgmr.msra.gmra.mrb[24].mxu0 %vm609_vm1, %v2272_v31  ;;  %2276 = vmatprep.subr.msk.bf16.mxu1 %vm613_vm0, %v1582_v34 }
 0x344   : > { %v1644_v37 = vpop.permute.xlu1 %1643  ;;  %1597 = vmatpush1.bf16.msra.mxu1 %v1591_v36  ;;  %1691 = vmatprep.mubr.bf16.mxu0 %v2449_v0 }
 0x345   : > { %2282 = vmatprep.subr.msk.bf16.mxu1 %vm613_vm0, %v1444_v10  ;;  %v1642_v39 = vpop.permute.xlu0 %1641 }
 0x346   : > { %v1645_v40 = vsel %vm994_vm5, %v1644_v37, %v1642_v39  ;;  %v1648_v41 = vsel %vm994_vm5, %v1642_v39, %v1644_v37 }
 0x347   : > { %v1654_v43 = vsel %vm613_vm0, %v1648_v41, 0  ;;  %2277 = vmatmul.mubr.msk.bf16.vlgmr.msra.gmra.mrb[24].mxu1 %vm609_vm1, %v2275_v38  ;;  %2279 = vmatprep.subr.msk.bf16.mxu0 %vm613_vm0, %v1645_v40 }
 0x348   : > { %v1761_v45 = vpop.permute.xlu1 %1760  ;;  %1660 = vmatpush1.bf16.msra.mxu0 %v1654_v43  ;;  %1716 = vmatpush1.bf16.msra.mxu1 %v1710_v44 }
 0x349   : > { %v1759_v48 = vpop.permute.xlu0 %1758  ;;  %1747 = vmatprep.mubr.bf16.mxu1 %v2449_v0 }
 0x34a   : > { %v1762_v49 = vsel %vm1121_vm6, %v1759_v48, %v1761_v45  ;;  %v1765_v51 = vsel %vm1121_vm6, %v1761_v45, %v1759_v48 }
 0x34b   : > { %v1772_v57 = vsel %vm613_vm0, %v1762_v49, 0  ;;  %2280 = vmatmul.mubr.msk.bf16.vlgmr.msra.gmra.mrb[28].mxu0 %vm609_vm1, %v2278_v47  ;;  %2285 = vmatprep.subr.msk.bf16.mxu0 %vm613_vm0, %v1765_v51 }
 0x34c   : > { %v1824_v58 = vpop.permute.xlu1 %1823  ;;  %1777 = vmatpush1.bf16.msra.mxu0 %v1772_v57  ;;  %1808 = vmatprep.mubr.bf16.mxu0 %v2449_v0 }
 0x34d   : > { %v1822_v62 = vpop.permute.xlu0 %1821 }
 0x34e   : > { %v1825_v63 = vsel %vm1194_vm7, %v1822_v62, %v1824_v58  ;;  %v1828_v2 = vsel %vm1194_vm7, %v1824_v58, %v1822_v62 }
 0x34f   : > { %v1835_v3 = vsel %vm613_vm0, %v1825_v63, 0  ;;  %2283 = vmatmul.mubr.msk.bf16.vlgmr.msra.gmra.mrb[28].mxu1 %vm609_vm1, %v2281_v59  ;;  %2288 = vmatprep.subr.msk.bf16.mxu1 %vm613_vm0, %v1828_v2 }
 0x350   : > { %v1887_v4 = vpop.permute.xlu1 %1886  ;;  %1840 = vmatpush1.bf16.msra.mxu1 %v1835_v3  ;;  %1871 = vmatprep.mubr.bf16.mxu1 %v2449_v0 }
 0x351   : > { %v1885_v7 = vpop.permute.xlu0 %1884 }
 0x352   : > { %v1888_v9 = vsel %vm1267_vm8, %v1885_v7, %v1887_v4  ;;  %v1891_v10 = vsel %vm1267_vm8, %v1887_v4, %v1885_v7 }
 0x353   : > { %v1898_v11 = vsel %vm613_vm0, %v1888_v9, 0  ;;  %2286 = vmatmul.mubr.msk.bf16.vlgmr.msra.gmra.mrb[32].mxu0 %vm609_vm1, %v2284_v5  ;;  %2291 = vmatprep.subr.msk.bf16.mxu0 %vm613_vm0, %v1891_v10 }
 0x354   : > { %v1950_v12 = vpop.permute.xlu1 %1949  ;;  %1903 = vmatpush1.bf16.msra.mxu0 %v1898_v11  ;;  %1934 = vmatprep.mubr.bf16.mxu0 %v2449_v0 }
 0x355   : > { %v1948_v15 = vpop.permute.xlu0 %1947 }
 0x356   : > { %v1951_v16 = vsel %vm1340_vm9, %v1948_v15, %v1950_v12  ;;  %v1954_v17 = vsel %vm1340_vm9, %v1950_v12, %v1948_v15 }
 0x357   : > { %v1961_v18 = vsel %vm613_vm0, %v1951_v16, 0  ;;  %2289 = vmatmul.mubr.msk.bf16.vlgmr.msra.gmra.mrb[32].mxu1 %vm609_vm1, %v2287_v14  ;;  %2294 = vmatprep.subr.msk.bf16.mxu1 %vm613_vm0, %v1954_v17 }
 0x358   : > { %1966 = vmatpush1.bf16.msra.mxu1 %v1961_v18  ;;  %1997 = vmatprep.mubr.bf16.mxu1 %v2449_v0 }
 0x35b   : > { %2292 = vmatmul.mubr.msk.bf16.vlgmr.msra.gmra.mrb[36].mxu0 %vm609_vm1, %v2290_v19 }
 0x35c   : > { %2060 = vmatprep.mubr.bf16.mxu0 %v2449_v0 }
 0x35f   : > { %2295 = vmatmul.mubr.msk.bf16.vlgmr.msra.gmra.mrb[36].mxu1 %vm609_vm1, %v2293_v21 }
 0x360   : > { %2113 = vmatprep.mubr.bf16.mxu1 %v2449_v0 }
 0x366   : > { %v1449_v31 = vpop.permute.xlu0 %1448 }
 0x412   : > { %v1504_v22 = vpop.f32.mrb[20].mxu1 }
 0x413   : > { %v1511_v24 = vmul.f32 %v1504_v22, %v2785_v54  ;;  %v1506_v26 = vpop.f32.mrb[21].mxu1 }
 0x414   : > { %v1512_v27 = vmul.f32 %v1506_v26, %v2789_v56  ;;  %v1508_v28 = vpop.f32.mrb[22].mxu1 }
 0x415   : > { %v1509_v30 = vpop.f32.mrb[23].mxu1  ;;  %v1513_v34 = vadd.f32 %v1511_v24, %v1449_v31 }
 0x416   : > { %v1567_v33 = vpop.f32.mrb[24].mxu0  ;;  %v1514_v37 = vadd.f32 %v1512_v27, %v1449_v31 }
 0x417   : > { %v1574_v35 = vmul.f32 %v1567_v33, %v2793_v60  ;;  %v1569_v36 = vpop.f32.mrb[25].mxu0 }
 0x418   : > { %v1575_v38 = vmul.f32 %v1569_v36, %v2798_v1  ;;  %v1571_v39 = vpop.f32.mrb[26].mxu0 }
 0x419   : > { %v1576_v40 = vadd.f32 %v1574_v35, %v1513_v34  ;;  %v1572_v0 = vpop.f32.mrb[27].mxu0 }
 0x41a   : > { %v1577_v41 = vadd.f32 %v1575_v38, %v1514_v37  ;;  %v1630_v43 = vpop.f32.mrb[24].mxu1 }
 0x41b   : > { %v1637_v54 = vmul.f32 %v1630_v43, %v2802_v8  ;;  %v1632_v44 = vpop.f32.mrb[25].mxu1 }
 0x41c   : > { %v1638_v56 = vmul.f32 %v1632_v44, %v2807_v13  ;;  %v1634_v45 = vpop.f32.mrb[26].mxu1 }
 0x41d   : > { %v1639_v47 = vadd.f32 %v1637_v54, %v1576_v40  ;;  %v1635_v48 = vpop.f32.mrb[27].mxu1 }
 0x41e   : > { %v1640_v49 = vadd.f32 %v1638_v56, %v1577_v41  ;;  %v1693_v51 = vpop.f32.mrb[28].mxu0 }
 0x41f   : > { %v1700_v60 = vmul.f32 %v1693_v51, %v2811_v20  ;;  %v1695_v57 = vpop.f32.mrb[29].mxu0 }
 0x420   : > { %v1701_v1 = vmul.f32 %v1695_v57, %v2815_v23  ;;  %v1697_v58 = vpop.f32.mrb[30].mxu0  ;;  %v2017_v57 = vpop.permute.xlu0 %2016 }
 0x421   : > { %v1698_v59 = vpop.f32.mrb[31].mxu0  ;;  %v1702_v62 = vadd.f32 %v1700_v60, %v1639_v47 }
 0x422   : > { %v1749_v63 = vpop.f32.mrb[28].mxu1  ;;  %v1703_v2 = vadd.f32 %v1701_v1, %v1640_v49 }
 0x423   : > { %v1756_v3 = vadd.f32 %v1749_v63, %v1702_v62  ;;  %v1751_v8 = vpop.f32.mrb[29].mxu1 }
 0x424   : > { %v1757_v4 = vadd.f32 %v1751_v8, %v1703_v2  ;;  %v1753_v5 = vpop.f32.mrb[30].mxu1 }
 0x425   : > { %v1754_v13 = vpop.f32.mrb[31].mxu1 }
 0x426   : > { %v1810_v7 = vpop.f32.mrb[32].mxu0 }
 0x427   : > { %v1817_v9 = vmul.f32 %v1810_v7, %v2821_v42  ;;  %v1812_v10 = vpop.f32.mrb[33].mxu0 }
 0x428   : > { %v1818_v11 = vmul.f32 %v1812_v10, %v2825_v46  ;;  %v1814_v20 = vpop.f32.mrb[34].mxu0 }
 0x429   : > { %v1819_v12 = vadd.f32 %v1817_v9, %v1756_v3  ;;  %v1815_v14 = vpop.f32.mrb[35].mxu0  ;;  %v2308_v9 = vcombine.low %v2639_v29, %v2639_v29 }
 0x42a   : > { %v1820_v23 = vadd.f32 %v1818_v11, %v1757_v4  ;;  %v1873_v15 = vpop.f32.mrb[32].mxu1 }
 0x42b   : > { %v1880_v16 = vmul.f32 %v1873_v15, %v2829_v55  ;;  %v1875_v17 = vpop.f32.mrb[33].mxu1 }
 0x42c   : > { %v1881_v18 = vmul.f32 %v1875_v17, %v2834_v61  ;;  %v1877_v19 = vpop.f32.mrb[34].mxu1 }
 0x42d   : > { %v1882_v21 = vadd.f32 %v1880_v16, %v1819_v12  ;;  %v1878_v22 = vpop.f32.mrb[35].mxu1 }
 0x42e   : > { %v1883_v24 = vadd.f32 %v1881_v18, %v1820_v23  ;;  %v1936_v26 = vpop.f32.mrb[36].mxu0 }
 0x42f   : > { %v1943_v42 = vmul.f32 %v1936_v26, %v2838_v6  ;;  %v1938_v27 = vpop.f32.mrb[37].mxu0 }
 0x430   : > { %v1944_v46 = vmul.f32 %v1938_v27, %v2842_v50  ;;  %v1940_v28 = vpop.f32.mrb[38].mxu0  ;;  %v2012_v50 = vld [vmem:[%s3055_s14] sm:$0x3] }
 0x431   : > { %v1945_v30 = vadd.f32 %v1943_v42, %v1882_v21  ;;  %v1941_v31 = vpop.f32.mrb[39].mxu0 }
 0x432   : > { %v1946_v33 = vadd.f32 %v1944_v46, %v1883_v24  ;;  %v1999_v34 = vpop.f32.mrb[36].mxu1 }
 0x433   : > { %v2006_v55 = vmul.f32 %v2849_v52, %v1999_v34  ;;  %v2001_v35 = vpop.f32.mrb[37].mxu1  ;;  %v2071_v52 = vld [vmem:[%s3056_s15] sm:$0x3] }
 0x434   : > { %v2007_v61 = vmul.f32 %v2854_v53, %v2001_v35  ;;  %v2003_v36 = vpop.f32.mrb[38].mxu1  ;;  %v2076_v53 = vpop.permute.xlu1 %2075 }
 0x435   : > { %v2008_v37 = vadd.f32 %v2006_v55, %v1945_v30  ;;  %v2004_v38 = vpop.f32.mrb[39].mxu1 }
 0x436   : > { %v2009_v39 = vadd.f32 %v2007_v61, %v1946_v33 }
 0x437   : > { %v2010_v40 = vpack.c.bf16 %v2008_v37, %v2008_v37 }
 0x438   : > { %v2011_v0 = vpack.c.bf16 %v2009_v39, %v2009_v39 }
 0x439   : > { %v2023_v6 = vsel %vm613_vm0, %v2010_v40, 0 }
 0x43a   : > { %2296 = vmatprep.subr.msk.bf16.mxu0 %vm613_vm0, %v2011_v0  ;;  %2298 = vmatprep.subr.msk.bf16.mxu1 %vm613_vm0, %v2011_v0 }
 0x43b   : > { %2029 = vmatpush1.bf16.msra.mxu0 %v2023_v6  ;;  %2082 = vmatpush1.bf16.msra.mxu1 %v2023_v6 }
 0x43e   : > { %2297 = vmatmul.mubr.msk.bf16.vlgmr.msra.gmra.mrb[40].mxu0 %vm609_vm1, %v2012_v50  ;;  %2299 = vmatmul.mubr.msk.bf16.vlgmr.msra.gmra.mrb[40].mxu1 %vm609_vm1, %v2071_v52 }
 0x511   : > { %v2062_v41 = vpop.f32.mrb[40].mxu0  ;;  %v2115_v43 = vpop.f32.mrb[40].mxu1 }
 0x512   : > { %v2116_v54 = vadd.f32 %v2115_v43, %v2076_v53  ;;  %v2064_v44 = vpop.f32.mrb[41].mxu0  ;;  %v2117_v56 = vpop.f32.mrb[41].mxu1  ;;  %v2063_v58 = vadd.f32 %v2062_v41, %v2017_v57 }
 0x513   : > { %v2118_v45 = vadd.f32 %v2117_v56, %v2076_v53  ;;  %v2119_v47 = vpop.f32.mrb[42].mxu1  ;;  %v2066_v48 = vpop.f32.mrb[42].mxu0  ;;  %v2065_v59 = vadd.f32 %v2064_v44, %v2017_v57 }
 0x514   : > { %v2122_v49 = vmul.f32 0.5, %v2116_v54  ;;  %v2120_v51 = vpop.f32.mrb[43].mxu1  ;;  %v2067_v60 = vpop.f32.mrb[43].mxu0 }
 0x515   : > { %v2123_v1 = vmul.f32 0.5, %v2118_v45 }
 0x516   : > { %2377 = vtanh.f32 %v2122_v49 }
 0x517   : > { %2379 = vtanh.f32 %v2123_v1 }
 0x518   : > { %2381 = vtanh.f32 %v2063_v58 }
 0x519   : > { %2383 = vtanh.f32 %v2065_v59 }
 0x520   : > { %v2378_v62 = vpop.eup %2377 }
 0x521   : > { %v2380_v63 = vpop.eup %2379  ;;  %v2126_v2 = vadd.f32 1.0, %v2378_v62 }
 0x522   : > { %v2127_v3 = vadd.f32 1.0, %v2380_v63  ;;  %v2382_v4 = vpop.eup %2381 }
 0x523   : > { %v2128_v8 = vmul.f32 0.5, %v2126_v2  ;;  %v2384_v13 = vpop.eup %2383 }
 0x524   : > { %v2129_v5 = vmul.f32 0.5, %v2127_v3 }
 0x525   : > { %v2130_v7 = vmul.f32 %v2382_v4, %v2128_v8 }
 0x526   : > { %v2131_v10 = vmul.f32 %v2384_v13, %v2129_v5 }
 0x527   : > { %v2136_v11 = vadd.f32 %v2130_v7, %v721_v32 }
 0x528   : > { %v2137_v20 = vadd.f32 %v2308_v9, %v2131_v10 }
 0x52a   : > { %v2140_v12 = vcombine.low %v2136_v11, %v2137_v20 }
 0x52c   : > { %2142 = vst [vmem:[%s583_s19] sm:$0xff] %v2140_v12 }
 0x52d   : > { %2398 = shalt.err (!%p2395_p3)
}
 0x52e   : > { %s2399_s23 = scalar_lea.hbm %s2999_s29, 128  ;;  %s2403_s19 = scalar_lea.hbm %s3088_s18, 256 }
 0x52f   : > { %p2400_p4 = scmp.ne.s32.totalorder %s2999_s29, %s2399_s23  ;;  %p2404_p9 = scmp.lt.u32.totalorder %s2999_s29, %s3088_s18 }
 0x530   : > { %p2405_p10 = scmp.lt.u32.totalorder %s2403_s19, %s2399_s23  ;;  %p2407_p12 = scmp.lt.u32.totalorder %s2399_s23, %s2999_s29 }
 0x531   : > { %p2401_p7 = pnand %p2400_p4, %p2592_p5 }
 0x532   : > { %p2406_p11 = por %p2405_p10, %p2404_p9 }
 0x533   : > { %p2402_p8 = pneg %p2401_p7 }
 0x534   : > { %p2408_p13 = por %p2407_p12, %p2406_p11 }
 0x536   : > { %p2409_p0 = pnand %p2408_p13, %p2402_p8 }
 0x538   : > { %2412 = shalt.err (!%p2409_p0)
}
 0x539   : > { %2309 = dma.vmem_to_hbm [thread:$0]  (%p2592_p5), %s3001_s20, 128, %s2999_s29, %s2144_s24  }
 0x53a PF: > { %s3089_s30 = sld [smem:[#allocation8_spill]]  ;;  %s3090_s0 = sld [smem:[#allocation6_spill]] }
 0x540   : > { %p2315_p1 = scmp.ge.s32.totalorder %s3089_s30, 2  ;;  %s2170_s22 = sand.u32 1, %s3090_s0  }
 0x541   : > { %s2171_s25 = scalar_lea.sflag [#allocation4], %s2170_s22 }
 0x542   : > { %p2312_p2 = pnand %p2315_p1, %p2596_p6 }
 0x544   : > { %2430 = dma.done.wait (!%p2312_p2), %s2171_s25, 128  }
 0x545   : > { %2432 = vsyncadd (!%p2312_p2), %s2171_s25, 4294967168  ;;  %s3092_s30 = sld [smem:[#allocation9_spill]]  ;;  %s3093_s23 = sld [smem:[#allocation7_spill]] }
 0x546   : > { %s3094_s29 = sld [smem:[#allocation10_spill]]  ;;  %s3095_s27 = smov %s2439_s28 }
 0x54b   : > { %p28_p3 = scmp.ge.s32.totalorder %s3092_s30, 4   ;;  %s3096_s28 = smov %s3093_s23 }
 0x54d   :  { %30 = sbr.rel (!%p28_p3) target bundleno = 9 (0x9), region = 146 }
 0x554   :  { %2176 = vsyncpa [#allocation4], 1 }
 0x555   :  { %2178 = vsyncpa [#allocation4 + $0x1], 1 }

</bundles_post_ra>
